<compile_context>
chip_gen: v7x
topology: tpu7x:2x2x1
jax: 0.10.0
libtpu: 0.0.40
codegen_flags: <defaults>
</compile_context>

<pallas_src>
import functools
import math

import jax
import jax.numpy as jnp
from jax.experimental import pallas as pl
from jax.experimental.pallas import tpu as pltpu

PAD_IDX = 1
LN_EPS = 1e-5


# ----------------------------- tiling helper --------------------------------


def _pick_tile(dim, desired, granule):
    """Largest tile <= desired that divides dim and is a multiple of granule,
    or the full dim if dim is not a multiple of granule (Pallas (8,128) rule)."""
    if dim % granule != 0:
        return dim
    t = min(desired, dim)
    t = max(granule, t - (t % granule))
    while dim % t != 0:
        t -= granule
    return t


def _bf16(x):
    # bf16 at the MXU inputs, f32 accumulation (preferred_element_type below).
    return x.astype(jnp.bfloat16)


# ------------------------------ linear (bias) --------------------------------


def _linear_kernel(x_ref, w_ref, b_ref, o_ref):
    k = pl.program_id(2)

    @pl.when(k == 0)
    def _():
        o_ref[...] = jnp.zeros_like(o_ref)

    # accumulate directly into the resident f32 output block (no acc scratch)
    o_ref[...] += jnp.dot(_bf16(x_ref[...]), _bf16(w_ref[...]),
                          preferred_element_type=jnp.float32)

    @pl.when(k == pl.num_programs(2) - 1)
    def _():
        o_ref[...] += b_ref[...]


def linear(x, w, b, *, tm=256, tn=256, tk=512):
    # x: (M, K), w: (K, N), b: (1, N) -> (M, N)
    M, K = x.shape
    N = w.shape[1]
    tm = _pick_tile(M, tm, 8)
    tn = _pick_tile(N, tn, 128)
    tk = _pick_tile(K, tk, 128)
    return pl.pallas_call(
        _linear_kernel,
        out_shape=jax.ShapeDtypeStruct((M, N), jnp.float32),
        grid=(M // tm, N // tn, K // tk),
        in_specs=[
            pl.BlockSpec((tm, tk), lambda i, j, k: (i, k)),
            pl.BlockSpec((tk, tn), lambda i, j, k: (k, j)),
            pl.BlockSpec((1, tn), lambda i, j, k: (0, j)),
        ],
        out_specs=pl.BlockSpec((tm, tn), lambda i, j, k: (i, j)),
        compiler_params=pltpu.CompilerParams(
            dimension_semantics=("parallel", "parallel", "arbitrary")),
    )(x, w, b)


# ----------------- linear + bias + residual + LayerNorm (fused) --------------


def _linear_resid_ln_kernel(x_ref, w_ref, b_ref, r_ref, g_ref, bb_ref, o_ref):
    k = pl.program_id(1)

    @pl.when(k == 0)
    def _():
        o_ref[...] = jnp.zeros_like(o_ref)

    o_ref[...] += jnp.dot(_bf16(x_ref[...]), _bf16(w_ref[...]),
                          preferred_element_type=jnp.float32)

    @pl.when(k == pl.num_programs(1) - 1)
    def _():
        # post-LN sublayer: LN(resid + (x @ w + b))
        y = o_ref[...] + b_ref[...] + r_ref[...]
        mu = jnp.mean(y, axis=-1, keepdims=True)
        var = jnp.mean((y - mu) ** 2, axis=-1, keepdims=True)
        o_ref[...] = (y - mu) * jax.lax.rsqrt(var + LN_EPS) * g_ref[...] + bb_ref[...]


def linear_resid_ln(x, w, b, resid, gamma, beta, *, tm=256, tk=512):
    # output width N kept untiled (tn = N) so the LN row reduction is local.
    M, K = x.shape
    N = w.shape[1]
    tm = _pick_tile(M, tm, 8)
    tk = _pick_tile(K, tk, 128)
    return pl.pallas_call(
        _linear_resid_ln_kernel,
        out_shape=jax.ShapeDtypeStruct((M, N), jnp.float32),
        grid=(M // tm, K // tk),
        in_specs=[
            pl.BlockSpec((tm, tk), lambda i, k: (i, k)),
            pl.BlockSpec((tk, N), lambda i, k: (k, 0)),
            pl.BlockSpec((1, N), lambda i, k: (0, 0)),
            pl.BlockSpec((tm, N), lambda i, k: (i, 0)),
            pl.BlockSpec((1, N), lambda i, k: (0, 0)),
            pl.BlockSpec((1, N), lambda i, k: (0, 0)),
        ],
        out_specs=pl.BlockSpec((tm, N), lambda i, k: (i, 0)),
        compiler_params=pltpu.CompilerParams(
            dimension_semantics=("parallel", "arbitrary")),
    )(x, w, b, resid, gamma, beta)


# ------------------- fused FFN + residual + LayerNorm ------------------------


def _ffn_resid_ln_kernel(x_ref, w1_ref, b1_ref, w2_ref, b2_ref, g_ref, bb_ref,
                         o_ref):
    f = pl.program_id(1)

    @pl.when(f == 0)
    def _():
        o_ref[...] = jnp.zeros_like(o_ref)

    x = x_ref[...]                                     # (tm, D) -- also residual
    h = jnp.dot(_bf16(x), _bf16(w1_ref[...]),
                preferred_element_type=jnp.float32) + b1_ref[...]
    h = jnp.maximum(h, 0.0)                            # (tm, tf) stays in VMEM/vregs
    o_ref[...] += jnp.dot(_bf16(h), _bf16(w2_ref[...]),
                          preferred_element_type=jnp.float32)

    @pl.when(f == pl.num_programs(1) - 1)
    def _():
        y = o_ref[...] + b2_ref[...] + x               # residual = FFN input
        mu = jnp.mean(y, axis=-1, keepdims=True)
        var = jnp.mean((y - mu) ** 2, axis=-1, keepdims=True)
        o_ref[...] = (y - mu) * jax.lax.rsqrt(var + LN_EPS) * g_ref[...] + bb_ref[...]


def ffn_resid_ln(x, p, gamma, beta, *, tm=256, tf=512):
    M, D = x.shape
    F = p["w1"].shape[1]
    tm = _pick_tile(M, tm, 8)
    tf = _pick_tile(F, tf, 128)
    return pl.pallas_call(
        _ffn_resid_ln_kernel,
        out_shape=jax.ShapeDtypeStruct((M, D), jnp.float32),
        grid=(M // tm, F // tf),
        in_specs=[
            pl.BlockSpec((tm, D), lambda i, f: (i, 0)),
            pl.BlockSpec((D, tf), lambda i, f: (0, f)),
            pl.BlockSpec((1, tf), lambda i, f: (0, f)),
            pl.BlockSpec((tf, D), lambda i, f: (f, 0)),
            pl.BlockSpec((1, D), lambda i, f: (0, 0)),
            pl.BlockSpec((1, D), lambda i, f: (0, 0)),
            pl.BlockSpec((1, D), lambda i, f: (0, 0)),
        ],
        out_specs=pl.BlockSpec((tm, D), lambda i, f: (i, 0)),
        compiler_params=pltpu.CompilerParams(
            dimension_semantics=("parallel", "arbitrary")),
    )(x, p["w1"], p["b1"], p["w2"], p["b2"], gamma, beta)


# --------------------------- flash attention ----------------------------------


def _attention_kernel(q_ref, k_ref, v_ref, qv_ref, kv_ref, o_ref,
                      m_sc, l_sc, acc_sc, *, scale, causal):
    ki = pl.program_id(3)
    tq = q_ref.shape[2]
    tk = k_ref.shape[2]

    @pl.when(ki == 0)
    def _():
        m_sc[...] = jnp.full_like(m_sc, -jnp.inf)
        l_sc[...] = jnp.zeros_like(l_sc)
        acc_sc[...] = jnp.zeros_like(acc_sc)

    # head slab delivered by BlockSpec (head-major layout); scale folded into q.
    q = _bf16(q_ref[0, 0] * scale)                     # (tq, Dh)
    k = _bf16(k_ref[0, 0])                             # (tk, Dh)
    s = jax.lax.dot_general(q, k, (((1,), (1,)), ((), ())),
                            preferred_element_type=jnp.float32)   # (tq, tk)

    # pad mask rebuilt from per-token validity vectors (no O(Sq*Sk) mask DMA)
    valid = (qv_ref[0] > 0.0) & (kv_ref[0] > 0.0)      # (tq,1)&(1,tk) -> (tq,tk)
    if causal:
        rows = pl.program_id(2) * tq + jax.lax.broadcasted_iota(jnp.int32, (tq, tk), 0)
        cols = ki * tk + jax.lax.broadcasted_iota(jnp.int32, (tq, tk), 1)
        valid = valid & (rows >= cols)
    s = jnp.where(valid, s, -1e9)

    # online softmax
    m_prev = m_sc[...]
    m_new = jnp.maximum(m_prev, jnp.max(s, axis=-1, keepdims=True))
    alpha = jnp.exp(m_prev - m_new)
    p = jnp.exp(s - m_new)
    l_sc[...] = alpha * l_sc[...] + jnp.sum(p, axis=-1, keepdims=True)
    acc_sc[...] = alpha * acc_sc[...] + jnp.dot(_bf16(p), _bf16(v_ref[0, 0]),
                                                preferred_element_type=jnp.float32)
    m_sc[...] = m_new

    @pl.when(ki == pl.num_programs(3) - 1)
    def _():
        # exact divide (review: keep softmax normalization exact)
        o_ref[0, 0] = (acc_sc[...] / l_sc[...]).astype(o_ref.dtype)


def attention(q, k, v, q_valid, k_valid, *, causal, tq=256, tk=256):
    # q: (B, H, Sq, Dh), k/v: (B, H, Sk, Dh)
    # q_valid: (B, Sq, 1) f32, k_valid: (B, 1, Sk) f32 (shared across heads)
    B, H, Sq, Dh = q.shape
    Sk = k.shape[2]
    scale = 1.0 / math.sqrt(Dh)
    tq = _pick_tile(Sq, tq, 8)
    tk = _pick_tile(Sk, tk, 8)
    return pl.pallas_call(
        functools.partial(_attention_kernel, scale=scale, causal=causal),
        out_shape=jax.ShapeDtypeStruct((B, H, Sq, Dh), jnp.float32),
        grid=(B, H, Sq // tq, Sk // tk),
        in_specs=[
            pl.BlockSpec((1, 1, tq, Dh), lambda b, h, qi, ki: (b, h, qi, 0)),
            pl.BlockSpec((1, 1, tk, Dh), lambda b, h, qi, ki: (b, h, ki, 0)),
            pl.BlockSpec((1, 1, tk, Dh), lambda b, h, qi, ki: (b, h, ki, 0)),
            pl.BlockSpec((1, tq, 1), lambda b, h, qi, ki: (b, qi, 0)),
            pl.BlockSpec((1, 1, tk), lambda b, h, qi, ki: (b, 0, ki)),
        ],
        out_specs=pl.BlockSpec((1, 1, tq, Dh), lambda b, h, qi, ki: (b, h, qi, 0)),
        scratch_shapes=[
            pltpu.VMEM((tq, 1), jnp.float32),
            pltpu.VMEM((tq, 1), jnp.float32),
            pltpu.VMEM((tq, Dh), jnp.float32),
        ],
        compiler_params=pltpu.CompilerParams(
            dimension_semantics=("parallel", "parallel", "parallel", "arbitrary")),
    )(q, k, v, q_valid, k_valid)


# ----------------- generator: matmul + online-LSE log_softmax ----------------


def _gen_logits_lse_kernel(x_ref, w_ref, b_ref, logit_ref, lse_ref, m_sc, l_sc):
    j = pl.program_id(1)
    k = pl.program_id(2)
    nj = pl.num_programs(1)
    nk = pl.num_programs(2)

    @pl.when(jnp.logical_and(j == 0, k == 0))
    def _():
        m_sc[...] = jnp.full_like(m_sc, -jnp.inf)
        l_sc[...] = jnp.zeros_like(l_sc)

    @pl.when(k == 0)
    def _():
        logit_ref[...] = jnp.zeros_like(logit_ref)

    logit_ref[...] += jnp.dot(_bf16(x_ref[...]), _bf16(w_ref[...]),
                              preferred_element_type=jnp.float32)

    @pl.when(k == nk - 1)
    def _():
        y = logit_ref[...] + b_ref[...]
        logit_ref[...] = y
        # online logsumexp over the vocab tiles (bounded VMEM for any vocab)
        m_new = jnp.maximum(m_sc[...], jnp.max(y, axis=-1, keepdims=True))
        l_sc[...] = (l_sc[...] * jnp.exp(m_sc[...] - m_new)
                     + jnp.sum(jnp.exp(y - m_new), axis=-1, keepdims=True))
        m_sc[...] = m_new

    @pl.when(jnp.logical_and(k == nk - 1, j == nj - 1))
    def _():
        lse_ref[...] = m_sc[...] + jnp.log(l_sc[...])


def _sub_lse_kernel(logit_ref, lse_ref, o_ref):
    o_ref[...] = logit_ref[...] - lse_ref[...]


def generator_log_softmax(x, w, b, *, tm=256, tn=512, tk=512):
    # log_softmax(x @ w + b): pass 1 writes logits + per-row LSE, pass 2
    # normalizes lane-dense tiles (logits never held as a tn=vocab VMEM block).
    M, K = x.shape
    N = w.shape[1]
    tm = _pick_tile(M, tm, 8)
    tn = _pick_tile(N, tn, 128)
    tk = _pick_tile(K, tk, 128)
    logits, lse = pl.pallas_call(
        _gen_logits_lse_kernel,
        out_shape=(jax.ShapeDtypeStruct((M, N), jnp.float32),
                   jax.ShapeDtypeStruct((M, 1), jnp.float32)),
        grid=(M // tm, N // tn, K // tk),
        in_specs=[
            pl.BlockSpec((tm, tk), lambda i, j, k: (i, k)),
            pl.BlockSpec((tk, tn), lambda i, j, k: (k, j)),
            pl.BlockSpec((1, tn), lambda i, j, k: (0, j)),
        ],
        out_specs=(pl.BlockSpec((tm, tn), lambda i, j, k: (i, j)),
                   pl.BlockSpec((tm, 1), lambda i, j, k: (i, 0))),
        scratch_shapes=[pltpu.VMEM((tm, 1), jnp.float32),
                        pltpu.VMEM((tm, 1), jnp.float32)],
        compiler_params=pltpu.CompilerParams(
            dimension_semantics=("parallel", "arbitrary", "arbitrary")),
    )(x, w, b)
    return pl.pallas_call(
        _sub_lse_kernel,
        out_shape=jax.ShapeDtypeStruct((M, N), jnp.float32),
        grid=(M // tm, N // tn),
        in_specs=[pl.BlockSpec((tm, tn), lambda i, j: (i, j)),
                  pl.BlockSpec((tm, 1), lambda i, j: (i, 0))],
        out_specs=pl.BlockSpec((tm, tn), lambda i, j: (i, j)),
        compiler_params=pltpu.CompilerParams(
            dimension_semantics=("parallel", "parallel")),
    )(logits, lse)


# ------------------------------ model glue -----------------------------------


def positional_encoding(seq_len, d_model):
    pos = jnp.arange(seq_len, dtype=jnp.float32)[:, None]
    i = jnp.arange(d_model, dtype=jnp.float32)[None, :]
    angle = pos / jnp.power(10000.0, (2.0 * jnp.floor(i / 2.0)) / d_model)
    return jnp.where(jnp.mod(jnp.arange(d_model), 2) == 0,
                     jnp.sin(angle), jnp.cos(angle)).astype(jnp.float32)


def embed(tokens, table, d_model):
    x = jnp.take(table, tokens, axis=0) * math.sqrt(d_model)
    pe = positional_encoding(tokens.shape[1], d_model)
    return x + pe[None]


def _split_heads(x, n_heads):
    B, S, D = x.shape
    return x.reshape(B, S, n_heads, D // n_heads).transpose(0, 2, 1, 3)


def _split_fused_heads(fused, n_parts, n_heads):
    # (B, S, n_parts*D) -> n_parts tensors of (B, H, S, Dh) with ONE transpose
    B, S, X = fused.shape
    D = X // n_parts
    Dh = D // n_heads
    f = fused.reshape(B, S, n_parts, n_heads, Dh).transpose(2, 0, 3, 1, 4)
    return tuple(f[i] for i in range(n_parts))


def _merge_heads(x):
    B, H, S, Dh = x.shape
    return x.transpose(0, 2, 1, 3).reshape(B, S, H * Dh)


def self_attention_block(x, valid, p, ln_g, ln_b, n_heads, *, causal):
    B, S, D = x.shape
    qkv = linear(x.reshape(B * S, D), p["wqkv"], p["bqkv"]).reshape(B, S, 3 * D)
    q, k, v = _split_fused_heads(qkv, 3, n_heads)
    o = attention(q, k, v, valid.reshape(B, S, 1), valid.reshape(B, 1, S),
                  causal=causal)
    o = _merge_heads(o).reshape(B * S, D)
    return linear_resid_ln(o, p["wo"], p["bo"], x.reshape(B * S, D),
                           ln_g, ln_b).reshape(B, S, D)


def cross_attention_block(x, enc_out, q_valid, k_valid, p, ln_g, ln_b, n_heads):
    B, St, D = x.shape
    Ss = enc_out.shape[1]
    q = linear(x.reshape(B * St, D), p["wq"], p["bq"]).reshape(B, St, D)
    kv = linear(enc_out.reshape(B * Ss, D), p["wkv"], p["bkv"]).reshape(B, Ss, 2 * D)
    qh = _split_heads(q, n_heads)
    kh, vh = _split_fused_heads(kv, 2, n_heads)
    o = attention(qh, kh, vh, q_valid.reshape(B, St, 1), k_valid.reshape(B, 1, Ss),
                  causal=False)
    o = _merge_heads(o).reshape(B * St, D)
    return linear_resid_ln(o, p["wo"], p["bo"], x.reshape(B * St, D),
                           ln_g, ln_b).reshape(B, St, D)


def encoder_layer(x, src_valid, lp, n_heads):
    x = self_attention_block(x, src_valid, lp["self_attn"],
                             lp["ln1_g"], lp["ln1_b"], n_heads, causal=False)
    B, S, D = x.shape
    return ffn_resid_ln(x.reshape(B * S, D), lp["ffn"],
                        lp["ln2_g"], lp["ln2_b"]).reshape(B, S, D)


def decoder_layer(x, enc_out, tgt_valid, src_valid, lp, n_heads):
    x = self_attention_block(x, tgt_valid, lp["self_attn"],
                             lp["ln1_g"], lp["ln1_b"], n_heads, causal=True)
    x = cross_attention_block(x, enc_out, tgt_valid, src_valid, lp["cross_attn"],
                              lp["ln2_g"], lp["ln2_b"], n_heads)
    B, S, D = x.shape
    return ffn_resid_ln(x.reshape(B * S, D), lp["ffn"],
                        lp["ln3_g"], lp["ln3_b"]).reshape(B, S, D)


def transformer_forward(params, src, tgt, *, d_model, n_heads):
    # per-token validity (replaces the (B,1,Sq,Sk) pad masks of the reference;
    # the outer-product + causal mask is rebuilt inside the attention kernel)
    src_valid = (src != PAD_IDX).astype(jnp.float32)   # (B, Ss)
    tgt_valid = (tgt != PAD_IDX).astype(jnp.float32)   # (B, St)

    # encoder: src_embed -> encoder
    h = embed(src, params["src_emb"], d_model)
    for lp in params["enc_layers"]:
        h = encoder_layer(h, src_valid, lp, n_heads)
    encoder_out = h

    # decoder: tgt_embed -> decoder
    h = embed(tgt, params["tgt_emb"], d_model)
    for lp in params["dec_layers"]:
        h = decoder_layer(h, encoder_out, tgt_valid, src_valid, lp, n_heads)
    decoder_out = h

    # generator + log_softmax (tiled, online-LSE)
    B, St, D = decoder_out.shape
    out = generator_log_softmax(decoder_out.reshape(B * St, D),
                                params["gen_w"], params["gen_b"]).reshape(B, St, -1)
    return out, decoder_out


# ----------------------------- param init ------------------------------------


def _dense(key, k_in, k_out):
    kw, _ = jax.random.split(key)
    return (jax.random.normal(kw, (k_in, k_out), jnp.float32) * 0.02,
            jnp.zeros((1, k_out), jnp.float32))


def _self_attn_params(key, d_model):
    ks = jax.random.split(key, 4)
    wq, bq = _dense(ks[0], d_model, d_model)
    wk, bk = _dense(ks[1], d_model, d_model)
    wv, bv = _dense(ks[2], d_model, d_model)
    wo, bo = _dense(ks[3], d_model, d_model)
    return dict(wqkv=jnp.concatenate([wq, wk, wv], axis=1),
                bqkv=jnp.concatenate([bq, bk, bv], axis=1),
                wo=wo, bo=bo)


def _cross_attn_params(key, d_model):
    ks = jax.random.split(key, 4)
    wq, bq = _dense(ks[0], d_model, d_model)
    wk, bk = _dense(ks[1], d_model, d_model)
    wv, bv = _dense(ks[2], d_model, d_model)
    wo, bo = _dense(ks[3], d_model, d_model)
    # pre-split at init (no runtime weight slicing): separate Q, fused KV
    return dict(wq=wq, bq=bq,
                wkv=jnp.concatenate([wk, wv], axis=1),
                bkv=jnp.concatenate([bk, bv], axis=1),
                wo=wo, bo=bo)


def _ffn_params(key, d_model, d_ff):
    k1, k2 = jax.random.split(key)
    w1, b1 = _dense(k1, d_model, d_ff)
    w2, b2 = _dense(k2, d_ff, d_model)
    return dict(w1=w1, b1=b1, w2=w2, b2=b2)


def _ln(d_model):
    return jnp.ones((1, d_model), jnp.float32), jnp.zeros((1, d_model), jnp.float32)


def init_params(key, vocab, d_model, d_ff):
    ks = jax.random.split(key, 8)
    g1, b1 = _ln(d_model)
    enc_layer = dict(
        self_attn=_self_attn_params(ks[0], d_model),
        ffn=_ffn_params(ks[1], d_model, d_ff),
        ln1_g=g1, ln1_b=b1, ln2_g=g1, ln2_b=b1,
    )
    dec_layer = dict(
        self_attn=_self_attn_params(ks[2], d_model),
        cross_attn=_cross_attn_params(ks[3], d_model),
        ffn=_ffn_params(ks[4], d_model, d_ff),
        ln1_g=g1, ln1_b=b1, ln2_g=g1, ln2_b=b1, ln3_g=g1, ln3_b=b1,
    )
    gen_w, gen_b = _dense(ks[5], d_model, vocab)
    return dict(
        src_emb=jax.random.normal(ks[6], (vocab, d_model), jnp.float32) * 0.02,
        tgt_emb=jax.random.normal(ks[7], (vocab, d_model), jnp.float32) * 0.02,
        enc_layers=[enc_layer],
        dec_layers=[dec_layer],
        gen_w=gen_w, gen_b=gen_b,
    )


# ------------------------------- main -----------------------------------------

if __name__ == "__main__":
    B, S_SRC, S_TGT = 2, 8, 8
    VOCAB, D_MODEL, D_FF, N_HEADS = 64, 32, 64, 4

    key = jax.random.PRNGKey(0)
    k_src, k_tgt, k_par = jax.random.split(key, 3)
    src = jax.random.randint(k_src, (B, S_SRC), 0, VOCAB, dtype=jnp.int32)
    tgt = jax.random.randint(k_tgt, (B, S_TGT), 0, VOCAB, dtype=jnp.int32)
    params = init_params(k_par, VOCAB, D_MODEL, D_FF)

    fwd = jax.jit(functools.partial(transformer_forward,
                                    d_model=D_MODEL, n_heads=N_HEADS))
    out, decoder_out = fwd(params, src, tgt)
    jax.block_until_ready((out, decoder_out))

    assert out.shape == (B, S_TGT, VOCAB)
    assert decoder_out.shape == (B, S_TGT, D_MODEL)
    print("KERNEL_OK")
</pallas_src>

<mosaic_0001>
module attributes {stable_mosaic.version = 11 : i64} {
  func.func @_linear_kernel(%arg0: i32, %arg1: i32, %arg2: i32, %arg3: memref<16x32xf32, #tpu.memory_space<vmem>>, %arg4: memref<32x96xf32, #tpu.memory_space<vmem>>, %arg5: memref<1x96xf32, #tpu.memory_space<vmem>>, %arg6: memref<16x96xf32, #tpu.memory_space<vmem>>) attributes {dimension_semantics = [#tpu.dimension_semantics<parallel>, #tpu.dimension_semantics<parallel>, #tpu.dimension_semantics<arbitrary>], iteration_bounds = array<i64: 1, 1, 1>, scalar_prefetch = 0 : i64, scratch_operands = 0 : i64, tpu.core_type = #tpu.core_type<tc>, window_params = [{transform_indices = @transform_0, window_bounds = array<i64: 16, 32>}, {transform_indices = @transform_1, window_bounds = array<i64: 32, 96>}, {transform_indices = @transform_2, window_bounds = array<i64: 1, 96>}, {transform_indices = @transform_3, window_bounds = array<i64: 16, 96>}]} {
    %c0_i32 = arith.constant 0 : i32
    %0 = arith.cmpi eq, %arg2, %c0_i32 : i32
    %1 = arith.extui %0 : i1 to i32
    %c0_i32_0 = arith.constant 0 : i32
    %2 = arith.cmpi ne, %1, %c0_i32_0 : i32
    scf.if %2 {
      %cst_10 = arith.constant 0.000000e+00 : f32
      %14 = vector.broadcast %cst_10 : f32 to vector<16x96xf32>
      %c0_11 = arith.constant 0 : index
      %c0_12 = arith.constant 0 : index
      %15 = vector.load %arg6[%c0_11, %c0_12] : memref<16x96xf32, #tpu.memory_space<vmem>>, vector<16x96xf32>
      tpu.vector_store %arg6[%c0_11, %c0_12], %14 {strides = array<i32>} : memref<16x96xf32, #tpu.memory_space<vmem>>, vector<16x96xf32>,
    } else {
    }
    %c0 = arith.constant 0 : index
    %c0_1 = arith.constant 0 : index
    %3 = vector.load %arg6[%c0, %c0_1] : memref<16x96xf32, #tpu.memory_space<vmem>>, vector<16x96xf32>
    %c0_2 = arith.constant 0 : index
    %c0_3 = arith.constant 0 : index
    %4 = vector.load %arg3[%c0_2, %c0_3] : memref<16x32xf32, #tpu.memory_space<vmem>>, vector<16x32xf32>
    %5 = arith.truncf %4 : vector<16x32xf32> to vector<16x32xbf16>
    %c0_4 = arith.constant 0 : index
    %c0_5 = arith.constant 0 : index
    %6 = vector.load %arg4[%c0_4, %c0_5] : memref<32x96xf32, #tpu.memory_space<vmem>>, vector<32x96xf32>
    %7 = arith.truncf %6 : vector<32x96xf32> to vector<32x96xbf16>
    %cst = arith.constant dense<0.000000e+00> : vector<16x96xf32>
    %8 = tpu.matmul %5, %7, %cst {dimension_numbers = #tpu.dot_dimension_numbers<[1], [0], [0], [1], [0, 0, 1, 1], [], []>} : vector<16x32xbf16>, vector<32x96xbf16>, vector<16x96xf32> -> vector<16x96xf32>
    %9 = arith.addf %3, %8 : vector<16x96xf32>
    %c0_6 = arith.constant 0 : index
    %c0_7 = arith.constant 0 : index
    %10 = vector.load %arg6[%c0_6, %c0_7] : memref<16x96xf32, #tpu.memory_space<vmem>>, vector<16x96xf32>
    tpu.vector_store %arg6[%c0_6, %c0_7], %9 {strides = array<i32>} : memref<16x96xf32, #tpu.memory_space<vmem>>, vector<16x96xf32>,
    %c0_i32_8 = arith.constant 0 : i32
    %11 = arith.cmpi eq, %arg2, %c0_i32_8 : i32
    %12 = arith.extui %11 : i1 to i32
    %c0_i32_9 = arith.constant 0 : i32
    %13 = arith.cmpi ne, %12, %c0_i32_9 : i32
    scf.if %13 {
      %c0_10 = arith.constant 0 : index
      %c0_11 = arith.constant 0 : index
      %14 = vector.load %arg6[%c0_10, %c0_11] : memref<16x96xf32, #tpu.memory_space<vmem>>, vector<16x96xf32>
      %c0_12 = arith.constant 0 : index
      %c0_13 = arith.constant 0 : index
      %15 = vector.load %arg5[%c0_12, %c0_13] : memref<1x96xf32, #tpu.memory_space<vmem>>, vector<1x96xf32>
      %16 = vector.broadcast %15 : vector<1x96xf32> to vector<16x96xf32>
      %17 = arith.addf %14, %16 : vector<16x96xf32>
      %c0_14 = arith.constant 0 : index
      %c0_15 = arith.constant 0 : index
      %18 = vector.load %arg6[%c0_14, %c0_15] : memref<16x96xf32, #tpu.memory_space<vmem>>, vector<16x96xf32>
      tpu.vector_store %arg6[%c0_14, %c0_15], %17 {strides = array<i32>} : memref<16x96xf32, #tpu.memory_space<vmem>>, vector<16x96xf32>,
    } else {
    }
    return
  }
  func.func @transform_0(%arg0: i32, %arg1: i32, %arg2: i32) -> (i32, i32) {
    %c0_i32 = arith.constant 0 : i32
    return %arg0, %arg2 : i32, i32
  }
  func.func @transform_1(%arg0: i32, %arg1: i32, %arg2: i32) -> (i32, i32) {
    %c0_i32 = arith.constant 0 : i32
    return %arg2, %arg1 : i32, i32
  }
  func.func @transform_2(%arg0: i32, %arg1: i32, %arg2: i32) -> (i32, i32) {
    %c0_i32 = arith.constant 0 : i32
    %c0_i32_0 = arith.constant 0 : i32
    return %c0_i32, %arg1 : i32, i32
  }
  func.func @transform_3(%arg0: i32, %arg1: i32, %arg2: i32) -> (i32, i32) {
    %c0_i32 = arith.constant 0 : i32
    return %arg0, %arg1 : i32, i32
  }
}

module attributes {stable_mosaic.version = 11 : i64} {
  func.func @_attention_kernel(%arg0: i32, %arg1: i32, %arg2: i32, %arg3: i32, %arg4: memref<1x1x8x8xf32, #tpu.memory_space<vmem>>, %arg5: memref<1x1x8x8xf32, #tpu.memory_space<vmem>>, %arg6: memref<1x1x8x8xf32, #tpu.memory_space<vmem>>, %arg7: memref<1x8x1xf32, #tpu.memory_space<vmem>>, %arg8: memref<1x1x8xf32, #tpu.memory_space<vmem>>, %arg9: memref<1x1x8x8xf32, #tpu.memory_space<vmem>>, %arg10: memref<8x1xf32, #tpu.memory_space<vmem>>, %arg11: memref<8x1xf32, #tpu.memory_space<vmem>>, %arg12: memref<8x8xf32, #tpu.memory_space<vmem>>) attributes {dimension_semantics = [#tpu.dimension_semantics<parallel>, #tpu.dimension_semantics<parallel>, #tpu.dimension_semantics<parallel>, #tpu.dimension_semantics<arbitrary>], iteration_bounds = array<i64: 2, 4, 1, 1>, scalar_prefetch = 0 : i64, scratch_operands = 3 : i64, tpu.core_type = #tpu.core_type<tc>, window_params = [{transform_indices = @transform_0, window_bounds = array<i64: 1, 1, 8, 8>}, {transform_indices = @transform_1, window_bounds = array<i64: 1, 1, 8, 8>}, {transform_indices = @transform_2, window_bounds = array<i64: 1, 1, 8, 8>}, {transform_indices = @transform_3, window_bounds = array<i64: 1, 8, 1>}, {transform_indices = @transform_4, window_bounds = array<i64: 1, 1, 8>}, {transform_indices = @transform_5, window_bounds = array<i64: 1, 1, 8, 8>}]} {
    %c0_i32 = arith.constant 0 : i32
    %0 = arith.cmpi eq, %arg3, %c0_i32 : i32
    %1 = arith.extui %0 : i1 to i32
    %c0_i32_0 = arith.constant 0 : i32
    %2 = arith.cmpi ne, %1, %c0_i32_0 : i32
    scf.if %2 {
      %cst_40 = arith.constant 0xFF800000 : f32
      %64 = vector.broadcast %cst_40 : f32 to vector<8x1xf32>
      %c0_41 = arith.constant 0 : index
      %c0_42 = arith.constant 0 : index
      %65 = vector.load %arg10[%c0_41, %c0_42] : memref<8x1xf32, #tpu.memory_space<vmem>>, vector<8x1xf32>
      tpu.vector_store %arg10[%c0_41, %c0_42], %64 {strides = array<i32>} : memref<8x1xf32, #tpu.memory_space<vmem>>, vector<8x1xf32>,
      %cst_43 = arith.constant 0.000000e+00 : f32
      %66 = vector.broadcast %cst_43 : f32 to vector<8x1xf32>
      %c0_44 = arith.constant 0 : index
      %c0_45 = arith.constant 0 : index
      %67 = vector.load %arg11[%c0_44, %c0_45] : memref<8x1xf32, #tpu.memory_space<vmem>>, vector<8x1xf32>
      tpu.vector_store %arg11[%c0_44, %c0_45], %66 {strides = array<i32>} : memref<8x1xf32, #tpu.memory_space<vmem>>, vector<8x1xf32>,
      %cst_46 = arith.constant 0.000000e+00 : f32
      %68 = vector.broadcast %cst_46 : f32 to vector<8x8xf32>
      %c0_47 = arith.constant 0 : index
      %c0_48 = arith.constant 0 : index
      %69 = vector.load %arg12[%c0_47, %c0_48] : memref<8x8xf32, #tpu.memory_space<vmem>>, vector<8x8xf32>
      tpu.vector_store %arg12[%c0_47, %c0_48], %68 {strides = array<i32>} : memref<8x8xf32, #tpu.memory_space<vmem>>, vector<8x8xf32>,
    } else {
    }
    %c0 = arith.constant 0 : index
    %c0_1 = arith.constant 0 : index
    %c0_2 = arith.constant 0 : index
    %c0_3 = arith.constant 0 : index
    %3 = vector.load %arg4[%c0, %c0_1, %c0_2, %c0_3] : memref<1x1x8x8xf32, #tpu.memory_space<vmem>>, vector<1x1x8x8xf32>
    %4 = vector.shape_cast %3 : vector<1x1x8x8xf32> to vector<8x8xf32>
    %cst = arith.constant 0.353553385 : f32
    %5 = vector.broadcast %cst : f32 to vector<8x8xf32>
    %6 = arith.mulf %4, %5 : vector<8x8xf32>
    %7 = arith.truncf %6 : vector<8x8xf32> to vector<8x8xbf16>
    %c0_4 = arith.constant 0 : index
    %c0_5 = arith.constant 0 : index
    %c0_6 = arith.constant 0 : index
    %c0_7 = arith.constant 0 : index
    %8 = vector.load %arg5[%c0_4, %c0_5, %c0_6, %c0_7] : memref<1x1x8x8xf32, #tpu.memory_space<vmem>>, vector<1x1x8x8xf32>
    %9 = vector.shape_cast %8 : vector<1x1x8x8xf32> to vector<8x8xf32>
    %10 = arith.truncf %9 : vector<8x8xf32> to vector<8x8xbf16>
    %cst_8 = arith.constant dense<0.000000e+00> : vector<8x8xf32>
    %11 = tpu.matmul %7, %10, %cst_8 {dimension_numbers = #tpu.dot_dimension_numbers<[1], [1], [0], [0], [0, 0, 1, 0], [], []>} : vector<8x8xbf16>, vector<8x8xbf16>, vector<8x8xf32> -> vector<8x8xf32>
    %c0_9 = arith.constant 0 : index
    %c0_10 = arith.constant 0 : index
    %c0_11 = arith.constant 0 : index
    %12 = vector.load %arg7[%c0_9, %c0_10, %c0_11] : memref<1x8x1xf32, #tpu.memory_space<vmem>>, vector<1x8x1xf32>
    %13 = vector.shape_cast %12 : vector<1x8x1xf32> to vector<8x1xf32>
    %cst_12 = arith.constant 0.000000e+00 : f32
    %14 = vector.broadcast %cst_12 : f32 to vector<8x1xf32>
    %15 = arith.cmpf ogt, %13, %14 : vector<8x1xf32>
    %c0_13 = arith.constant 0 : index
    %c0_14 = arith.constant 0 : index
    %c0_15 = arith.constant 0 : index
    %16 = vector.load %arg8[%c0_13, %c0_14, %c0_15] : memref<1x1x8xf32, #tpu.memory_space<vmem>>, vector<1x1x8xf32>
    %17 = vector.shape_cast %16 : vector<1x1x8xf32> to vector<1x8xf32>
    %cst_16 = arith.constant 0.000000e+00 : f32
    %18 = vector.broadcast %cst_16 : f32 to vector<1x8xf32>
    %19 = arith.cmpf ogt, %17, %18 : vector<1x8xf32>
    %20 = vector.broadcast %15 : vector<8x1xi1> to vector<8x8xi1>
    %21 = vector.broadcast %19 : vector<1x8xi1> to vector<8x8xi1>
    %22 = arith.andi %20, %21 : vector<8x8xi1>
    %c8_i32 = arith.constant 8 : i32
    %23 = arith.muli %arg2, %c8_i32 : i32
    %24 = tpu.iota {dimensions = array<i32: 0>} : vector<8x8xi32>
    %25 = vector.broadcast %23 : i32 to vector<8x8xi32>
    %26 = arith.addi %25, %24 : vector<8x8xi32>
    %c8_i32_17 = arith.constant 8 : i32
    %27 = arith.muli %arg3, %c8_i32_17 : i32
    %28 = tpu.iota {dimensions = array<i32: 1>} : vector<8x8xi32>
    %29 = vector.broadcast %27 : i32 to vector<8x8xi32>
    %30 = arith.addi %29, %28 : vector<8x8xi32>
    %31 = arith.cmpi sge, %26, %30 : vector<8x8xi32>
    %32 = arith.andi %22, %31 : vector<8x8xi1>
    %cst_18 = arith.constant -1.000000e+09 : f32
    %33 = vector.broadcast %cst_18 : f32 to vector<8x8xf32>
    %34 = arith.select %32, %11, %33 : vector<8x8xi1>, vector<8x8xf32>
    %c0_19 = arith.constant 0 : index
    %c0_20 = arith.constant 0 : index
    %35 = vector.load %arg10[%c0_19, %c0_20] : memref<8x1xf32, #tpu.memory_space<vmem>>, vector<8x1xf32>
    %cst_21 = arith.constant dense<0xFF800000> : vector<8xf32>
    %36 = vector.multi_reduction <maximumf>, %34, %cst_21 [1] : vector<8x8xf32> to vector<8xf32>
    %37 = vector.shape_cast %36 : vector<8xf32> to vector<8x1xf32>
    %38 = arith.maximumf %35, %37 : vector<8x1xf32>
    %39 = arith.subf %35, %38 : vector<8x1xf32>
    %40 = math.exp %39 : vector<8x1xf32>
    %41 = vector.broadcast %38 : vector<8x1xf32> to vector<8x8xf32>
    %42 = arith.subf %34, %41 : vector<8x8xf32>
    %43 = math.exp %42 : vector<8x8xf32>
    %c0_22 = arith.constant 0 : index
    %c0_23 = arith.constant 0 : index
    %44 = vector.load %arg11[%c0_22, %c0_23] : memref<8x1xf32, #tpu.memory_space<vmem>>, vector<8x1xf32>
    %45 = arith.mulf %40, %44 : vector<8x1xf32>
    %cst_24 = arith.constant dense<0.000000e+00> : vector<8xf32>
    %46 = vector.multi_reduction <add>, %43, %cst_24 [1] : vector<8x8xf32> to vector<8xf32>
    %47 = vector.shape_cast %46 : vector<8xf32> to vector<8x1xf32>
    %48 = arith.addf %45, %47 : vector<8x1xf32>
    %c0_25 = arith.constant 0 : index
    %c0_26 = arith.constant 0 : index
    %49 = vector.load %arg11[%c0_25, %c0_26] : memref<8x1xf32, #tpu.memory_space<vmem>>, vector<8x1xf32>
    tpu.vector_store %arg11[%c0_25, %c0_26], %48 {strides = array<i32>} : memref<8x1xf32, #tpu.memory_space<vmem>>, vector<8x1xf32>,
    %c0_27 = arith.constant 0 : index
    %c0_28 = arith.constant 0 : index
    %50 = vector.load %arg12[%c0_27, %c0_28] : memref<8x8xf32, #tpu.memory_space<vmem>>, vector<8x8xf32>
    %51 = vector.broadcast %40 : vector<8x1xf32> to vector<8x8xf32>
    %52 = arith.mulf %51, %50 : vector<8x8xf32>
    %53 = arith.truncf %43 : vector<8x8xf32> to vector<8x8xbf16>
    %c0_29 = arith.constant 0 : index
    %c0_30 = arith.constant 0 : index
    %c0_31 = arith.constant 0 : index
    %c0_32 = arith.constant 0 : index
    %54 = vector.load %arg6[%c0_29, %c0_30, %c0_31, %c0_32] : memref<1x1x8x8xf32, #tpu.memory_space<vmem>>, vector<1x1x8x8xf32>
    %55 = vector.shape_cast %54 : vector<1x1x8x8xf32> to vector<8x8xf32>
    %56 = arith.truncf %55 : vector<8x8xf32> to vector<8x8xbf16>
    %cst_33 = arith.constant dense<0.000000e+00> : vector<8x8xf32>
    %57 = tpu.matmul %53, %56, %cst_33 {dimension_numbers = #tpu.dot_dimension_numbers<[1], [0], [0], [1], [0, 0, 1, 1], [], []>} : vector<8x8xbf16>, vector<8x8xbf16>, vector<8x8xf32> -> vector<8x8xf32>
    %58 = arith.addf %52, %57 : vector<8x8xf32>
    %c0_34 = arith.constant 0 : index
    %c0_35 = arith.constant 0 : index
    %59 = vector.load %arg12[%c0_34, %c0_35] : memref<8x8xf32, #tpu.memory_space<vmem>>, vector<8x8xf32>
    tpu.vector_store %arg12[%c0_34, %c0_35], %58 {strides = array<i32>} : memref<8x8xf32, #tpu.memory_space<vmem>>, vector<8x8xf32>,
    %c0_36 = arith.constant 0 : index
    %c0_37 = arith.constant 0 : index
    %60 = vector.load %arg10[%c0_36, %c0_37] : memref<8x1xf32, #tpu.memory_space<vmem>>, vector<8x1xf32>
    tpu.vector_store %arg10[%c0_36, %c0_37], %38 {strides = array<i32>} : memref<8x1xf32, #tpu.memory_space<vmem>>, vector<8x1xf32>,
    %c0_i32_38 = arith.constant 0 : i32
    %61 = arith.cmpi eq, %arg3, %c0_i32_38 : i32
    %62 = arith.extui %61 : i1 to i32
    %c0_i32_39 = arith.constant 0 : i32
    %63 = arith.cmpi ne, %62, %c0_i32_39 : i32
    scf.if %63 {
      %c0_40 = arith.constant 0 : index
      %c0_41 = arith.constant 0 : index
      %64 = vector.load %arg12[%c0_40, %c0_41] : memref<8x8xf32, #tpu.memory_space<vmem>>, vector<8x8xf32>
      %c0_42 = arith.constant 0 : index
      %c0_43 = arith.constant 0 : index
      %65 = vector.load %arg11[%c0_42, %c0_43] : memref<8x1xf32, #tpu.memory_space<vmem>>, vector<8x1xf32>
      %66 = vector.broadcast %65 : vector<8x1xf32> to vector<8x8xf32>
      %67 = arith.divf %64, %66 : vector<8x8xf32>
      %c0_44 = arith.constant 0 : index
      %c0_45 = arith.constant 0 : index
      %c0_46 = arith.constant 0 : index
      %c0_47 = arith.constant 0 : index
      %68 = vector.load %arg9[%c0_44, %c0_45, %c0_46, %c0_47] : memref<1x1x8x8xf32, #tpu.memory_space<vmem>>, vector<1x1x8x8xf32>
      %69 = vector.shape_cast %68 : vector<1x1x8x8xf32> to vector<8x8xf32>
      %70 = vector.shape_cast %67 : vector<8x8xf32> to vector<1x1x8x8xf32>
      tpu.vector_store %arg9[%c0_44, %c0_45, %c0_46, %c0_47], %70 {strides = array<i32>} : memref<1x1x8x8xf32, #tpu.memory_space<vmem>>, vector<1x1x8x8xf32>,
    } else {
    }
    return
  }
  func.func @transform_0(%arg0: i32, %arg1: i32, %arg2: i32, %arg3: i32) -> (i32, i32, i32, i32) {
    %c0_i32 = arith.constant 0 : i32
    %c0_i32_0 = arith.constant 0 : i32
    return %arg0, %arg1, %arg2, %c0_i32 : i32, i32, i32, i32
  }
  func.func @transform_1(%arg0: i32, %arg1: i32, %arg2: i32, %arg3: i32) -> (i32, i32, i32, i32) {
    %c0_i32 = arith.constant 0 : i32
    %c0_i32_0 = arith.constant 0 : i32
    return %arg0, %arg1, %arg3, %c0_i32 : i32, i32, i32, i32
  }
  func.func @transform_2(%arg0: i32, %arg1: i32, %arg2: i32, %arg3: i32) -> (i32, i32, i32, i32) {
    %c0_i32 = arith.constant 0 : i32
    %c0_i32_0 = arith.constant 0 : i32
    return %arg0, %arg1, %arg3, %c0_i32 : i32, i32, i32, i32
  }
  func.func @transform_3(%arg0: i32, %arg1: i32, %arg2: i32, %arg3: i32) -> (i32, i32, i32) {
    %c0_i32 = arith.constant 0 : i32
    %c0_i32_0 = arith.constant 0 : i32
    return %arg0, %arg2, %c0_i32 : i32, i32, i32
  }
  func.func @transform_4(%arg0: i32, %arg1: i32, %arg2: i32, %arg3: i32) -> (i32, i32, i32) {
    %c0_i32 = arith.constant 0 : i32
    %c0_i32_0 = arith.constant 0 : i32
    return %arg0, %c0_i32, %arg3 : i32, i32, i32
  }
  func.func @transform_5(%arg0: i32, %arg1: i32, %arg2: i32, %arg3: i32) -> (i32, i32, i32, i32) {
    %c0_i32 = arith.constant 0 : i32
    %c0_i32_0 = arith.constant 0 : i32
    return %arg0, %arg1, %arg2, %c0_i32 : i32, i32, i32, i32
  }
}

module attributes {stable_mosaic.version = 11 : i64} {
  func.func @_linear_resid_ln_kernel(%arg0: i32, %arg1: i32, %arg2: memref<16x32xf32, #tpu.memory_space<vmem>>, %arg3: memref<32x32xf32, #tpu.memory_space<vmem>>, %arg4: memref<1x32xf32, #tpu.memory_space<vmem>>, %arg5: memref<16x32xf32, #tpu.memory_space<vmem>>, %arg6: memref<1x32xf32, #tpu.memory_space<vmem>>, %arg7: memref<1x32xf32, #tpu.memory_space<vmem>>, %arg8: memref<16x32xf32, #tpu.memory_space<vmem>>) attributes {dimension_semantics = [#tpu.dimension_semantics<parallel>, #tpu.dimension_semantics<arbitrary>], iteration_bounds = array<i64: 1, 1>, scalar_prefetch = 0 : i64, scratch_operands = 0 : i64, tpu.core_type = #tpu.core_type<tc>, window_params = [{transform_indices = @transform_0, window_bounds = array<i64: 16, 32>}, {transform_indices = @transform_1, window_bounds = array<i64: 32, 32>}, {pipeline_mode = #tpu.pipeline_mode<synchronous>, transform_indices = @transform_2, window_bounds = array<i64: 1, 32>}, {transform_indices = @transform_3, window_bounds = array<i64: 16, 32>}, {pipeline_mode = #tpu.pipeline_mode<synchronous>, transform_indices = @transform_4, window_bounds = array<i64: 1, 32>}, {pipeline_mode = #tpu.pipeline_mode<synchronous>, transform_indices = @transform_5, window_bounds = array<i64: 1, 32>}, {transform_indices = @transform_6, window_bounds = array<i64: 16, 32>}]} {
    %c0_i32 = arith.constant 0 : i32
    %0 = arith.cmpi eq, %arg1, %c0_i32 : i32
    %1 = arith.extui %0 : i1 to i32
    %c0_i32_0 = arith.constant 0 : i32
    %2 = arith.cmpi ne, %1, %c0_i32_0 : i32
    scf.if %2 {
      %cst_10 = arith.constant 0.000000e+00 : f32
      %14 = vector.broadcast %cst_10 : f32 to vector<16x32xf32>
      %c0_11 = arith.constant 0 : index
      %c0_12 = arith.constant 0 : index
      %15 = vector.load %arg8[%c0_11, %c0_12] : memref<16x32xf32, #tpu.memory_space<vmem>>, vector<16x32xf32>
      tpu.vector_store %arg8[%c0_11, %c0_12], %14 {strides = array<i32>} : memref<16x32xf32, #tpu.memory_space<vmem>>, vector<16x32xf32>,
    } else {
    }
    %c0 = arith.constant 0 : index
    %c0_1 = arith.constant 0 : index
    %3 = vector.load %arg8[%c0, %c0_1] : memref<16x32xf32, #tpu.memory_space<vmem>>, vector<16x32xf32>
    %c0_2 = arith.constant 0 : index
    %c0_3 = arith.constant 0 : index
    %4 = vector.load %arg2[%c0_2, %c0_3] : memref<16x32xf32, #tpu.memory_space<vmem>>, vector<16x32xf32>
    %5 = arith.truncf %4 : vector<16x32xf32> to vector<16x32xbf16>
    %c0_4 = arith.constant 0 : index
    %c0_5 = arith.constant 0 : index
    %6 = vector.load %arg3[%c0_4, %c0_5] : memref<32x32xf32, #tpu.memory_space<vmem>>, vector<32x32xf32>
    %7 = arith.truncf %6 : vector<32x32xf32> to vector<32x32xbf16>
    %cst = arith.constant dense<0.000000e+00> : vector<16x32xf32>
    %8 = tpu.matmul %5, %7, %cst {dimension_numbers = #tpu.dot_dimension_numbers<[1], [0], [0], [1], [0, 0, 1, 1], [], []>} : vector<16x32xbf16>, vector<32x32xbf16>, vector<16x32xf32> -> vector<16x32xf32>
    %9 = arith.addf %3, %8 : vector<16x32xf32>
    %c0_6 = arith.constant 0 : index
    %c0_7 = arith.constant 0 : index
    %10 = vector.load %arg8[%c0_6, %c0_7] : memref<16x32xf32, #tpu.memory_space<vmem>>, vector<16x32xf32>
    tpu.vector_store %arg8[%c0_6, %c0_7], %9 {strides = array<i32>} : memref<16x32xf32, #tpu.memory_space<vmem>>, vector<16x32xf32>,
    %c0_i32_8 = arith.constant 0 : i32
    %11 = arith.cmpi eq, %arg1, %c0_i32_8 : i32
    %12 = arith.extui %11 : i1 to i32
    %c0_i32_9 = arith.constant 0 : i32
    %13 = arith.cmpi ne, %12, %c0_i32_9 : i32
    scf.if %13 {
      %c0_10 = arith.constant 0 : index
      %c0_11 = arith.constant 0 : index
      %14 = vector.load %arg8[%c0_10, %c0_11] : memref<16x32xf32, #tpu.memory_space<vmem>>, vector<16x32xf32>
      %c0_12 = arith.constant 0 : index
      %c0_13 = arith.constant 0 : index
      %15 = vector.load %arg4[%c0_12, %c0_13] : memref<1x32xf32, #tpu.memory_space<vmem>>, vector<1x32xf32>
      %16 = vector.broadcast %15 : vector<1x32xf32> to vector<16x32xf32>
      %17 = arith.addf %14, %16 : vector<16x32xf32>
      %c0_14 = arith.constant 0 : index
      %c0_15 = arith.constant 0 : index
      %18 = vector.load %arg5[%c0_14, %c0_15] : memref<16x32xf32, #tpu.memory_space<vmem>>, vector<16x32xf32>
      %19 = arith.addf %17, %18 : vector<16x32xf32>
      %cst_16 = arith.constant dense<0.000000e+00> : vector<16xf32>
      %20 = vector.multi_reduction <add>, %19, %cst_16 [1] : vector<16x32xf32> to vector<16xf32>
      %21 = vector.shape_cast %20 : vector<16xf32> to vector<16x1xf32>
      %cst_17 = arith.constant 3.200000e+01 : f32
      %22 = vector.broadcast %cst_17 : f32 to vector<16x1xf32>
      %23 = arith.divf %21, %22 : vector<16x1xf32>
      %24 = vector.broadcast %23 : vector<16x1xf32> to vector<16x32xf32>
      %25 = arith.subf %19, %24 : vector<16x32xf32>
      %26 = arith.mulf %25, %25 : vector<16x32xf32>
      %cst_18 = arith.constant dense<0.000000e+00> : vector<16xf32>
      %27 = vector.multi_reduction <add>, %26, %cst_18 [1] : vector<16x32xf32> to vector<16xf32>
      %28 = vector.shape_cast %27 : vector<16xf32> to vector<16x1xf32>
      %cst_19 = arith.constant 3.200000e+01 : f32
      %29 = vector.broadcast %cst_19 : f32 to vector<16x1xf32>
      %30 = arith.divf %28, %29 : vector<16x1xf32>
      %31 = vector.broadcast %23 : vector<16x1xf32> to vector<16x32xf32>
      %32 = arith.subf %19, %31 : vector<16x32xf32>
      %cst_20 = arith.constant 9.99999974E-6 : f32
      %33 = vector.broadcast %cst_20 : f32 to vector<16x1xf32>
      %34 = arith.addf %30, %33 : vector<16x1xf32>
      %35 = math.rsqrt %34 : vector<16x1xf32>
      %36 = vector.broadcast %35 : vector<16x1xf32> to vector<16x32xf32>
      %37 = arith.mulf %32, %36 : vector<16x32xf32>
      %c0_21 = arith.constant 0 : index
      %c0_22 = arith.constant 0 : index
      %38 = vector.load %arg6[%c0_21, %c0_22] : memref<1x32xf32, #tpu.memory_space<vmem>>, vector<1x32xf32>
      %39 = vector.broadcast %38 : vector<1x32xf32> to vector<16x32xf32>
      %40 = arith.mulf %37, %39 : vector<16x32xf32>
      %c0_23 = arith.constant 0 : index
      %c0_24 = arith.constant 0 : index
      %41 = vector.load %arg7[%c0_23, %c0_24] : memref<1x32xf32, #tpu.memory_space<vmem>>, vector<1x32xf32>
      %42 = vector.broadcast %41 : vector<1x32xf32> to vector<16x32xf32>
      %43 = arith.addf %40, %42 : vector<16x32xf32>
      %c0_25 = arith.constant 0 : index
      %c0_26 = arith.constant 0 : index
      %44 = vector.load %arg8[%c0_25, %c0_26] : memref<16x32xf32, #tpu.memory_space<vmem>>, vector<16x32xf32>
      tpu.vector_store %arg8[%c0_25, %c0_26], %43 {strides = array<i32>} : memref<16x32xf32, #tpu.memory_space<vmem>>, vector<16x32xf32>,
    } else {
    }
    return
  }
  func.func @transform_0(%arg0: i32, %arg1: i32) -> (i32, i32) {
    %c0_i32 = arith.constant 0 : i32
    return %arg0, %arg1 : i32, i32
  }
  func.func @transform_1(%arg0: i32, %arg1: i32) -> (i32, i32) {
    %c0_i32 = arith.constant 0 : i32
    %c0_i32_0 = arith.constant 0 : i32
    return %arg1, %c0_i32 : i32, i32
  }
  func.func @transform_2(%arg0: i32, %arg1: i32) -> (i32, i32) {
    %c0_i32 = arith.constant 0 : i32
    %c0_i32_0 = arith.constant 0 : i32
    %c0_i32_1 = arith.constant 0 : i32
    return %c0_i32, %c0_i32_0 : i32, i32
  }
  func.func @transform_3(%arg0: i32, %arg1: i32) -> (i32, i32) {
    %c0_i32 = arith.constant 0 : i32
    %c0_i32_0 = arith.constant 0 : i32
    return %arg0, %c0_i32 : i32, i32
  }
  func.func @transform_4(%arg0: i32, %arg1: i32) -> (i32, i32) {
    %c0_i32 = arith.constant 0 : i32
    %c0_i32_0 = arith.constant 0 : i32
    %c0_i32_1 = arith.constant 0 : i32
    return %c0_i32, %c0_i32_0 : i32, i32
  }
  func.func @transform_5(%arg0: i32, %arg1: i32) -> (i32, i32) {
    %c0_i32 = arith.constant 0 : i32
    %c0_i32_0 = arith.constant 0 : i32
    %c0_i32_1 = arith.constant 0 : i32
    return %c0_i32, %c0_i32_0 : i32, i32
  }
  func.func @transform_6(%arg0: i32, %arg1: i32) -> (i32, i32) {
    %c0_i32 = arith.constant 0 : i32
    %c0_i32_0 = arith.constant 0 : i32
    return %arg0, %c0_i32 : i32, i32
  }
}

module attributes {stable_mosaic.version = 11 : i64} {
  func.func @_linear_kernel(%arg0: i32, %arg1: i32, %arg2: i32, %arg3: memref<16x32xf32, #tpu.memory_space<vmem>>, %arg4: memref<32x32xf32, #tpu.memory_space<vmem>>, %arg5: memref<1x32xf32, #tpu.memory_space<vmem>>, %arg6: memref<16x32xf32, #tpu.memory_space<vmem>>) attributes {dimension_semantics = [#tpu.dimension_semantics<parallel>, #tpu.dimension_semantics<parallel>, #tpu.dimension_semantics<arbitrary>], iteration_bounds = array<i64: 1, 1, 1>, scalar_prefetch = 0 : i64, scratch_operands = 0 : i64, tpu.core_type = #tpu.core_type<tc>, window_params = [{transform_indices = @transform_0, window_bounds = array<i64: 16, 32>}, {transform_indices = @transform_1, window_bounds = array<i64: 32, 32>}, {transform_indices = @transform_2, window_bounds = array<i64: 1, 32>}, {transform_indices = @transform_3, window_bounds = array<i64: 16, 32>}]} {
    %c0_i32 = arith.constant 0 : i32
    %0 = arith.cmpi eq, %arg2, %c0_i32 : i32
    %1 = arith.extui %0 : i1 to i32
    %c0_i32_0 = arith.constant 0 : i32
    %2 = arith.cmpi ne, %1, %c0_i32_0 : i32
    scf.if %2 {
      %cst_10 = arith.constant 0.000000e+00 : f32
      %14 = vector.broadcast %cst_10 : f32 to vector<16x32xf32>
      %c0_11 = arith.constant 0 : index
      %c0_12 = arith.constant 0 : index
      %15 = vector.load %arg6[%c0_11, %c0_12] : memref<16x32xf32, #tpu.memory_space<vmem>>, vector<16x32xf32>
      tpu.vector_store %arg6[%c0_11, %c0_12], %14 {strides = array<i32>} : memref<16x32xf32, #tpu.memory_space<vmem>>, vector<16x32xf32>,
    } else {
    }
    %c0 = arith.constant 0 : index
    %c0_1 = arith.constant 0 : index
    %3 = vector.load %arg6[%c0, %c0_1] : memref<16x32xf32, #tpu.memory_space<vmem>>, vector<16x32xf32>
    %c0_2 = arith.constant 0 : index
    %c0_3 = arith.constant 0 : index
    %4 = vector.load %arg3[%c0_2, %c0_3] : memref<16x32xf32, #tpu.memory_space<vmem>>, vector<16x32xf32>
    %5 = arith.truncf %4 : vector<16x32xf32> to vector<16x32xbf16>
    %c0_4 = arith.constant 0 : index
    %c0_5 = arith.constant 0 : index
    %6 = vector.load %arg4[%c0_4, %c0_5] : memref<32x32xf32, #tpu.memory_space<vmem>>, vector<32x32xf32>
    %7 = arith.truncf %6 : vector<32x32xf32> to vector<32x32xbf16>
    %cst = arith.constant dense<0.000000e+00> : vector<16x32xf32>
    %8 = tpu.matmul %5, %7, %cst {dimension_numbers = #tpu.dot_dimension_numbers<[1], [0], [0], [1], [0, 0, 1, 1], [], []>} : vector<16x32xbf16>, vector<32x32xbf16>, vector<16x32xf32> -> vector<16x32xf32>
    %9 = arith.addf %3, %8 : vector<16x32xf32>
    %c0_6 = arith.constant 0 : index
    %c0_7 = arith.constant 0 : index
    %10 = vector.load %arg6[%c0_6, %c0_7] : memref<16x32xf32, #tpu.memory_space<vmem>>, vector<16x32xf32>
    tpu.vector_store %arg6[%c0_6, %c0_7], %9 {strides = array<i32>} : memref<16x32xf32, #tpu.memory_space<vmem>>, vector<16x32xf32>,
    %c0_i32_8 = arith.constant 0 : i32
    %11 = arith.cmpi eq, %arg2, %c0_i32_8 : i32
    %12 = arith.extui %11 : i1 to i32
    %c0_i32_9 = arith.constant 0 : i32
    %13 = arith.cmpi ne, %12, %c0_i32_9 : i32
    scf.if %13 {
      %c0_10 = arith.constant 0 : index
      %c0_11 = arith.constant 0 : index
      %14 = vector.load %arg6[%c0_10, %c0_11] : memref<16x32xf32, #tpu.memory_space<vmem>>, vector<16x32xf32>
      %c0_12 = arith.constant 0 : index
      %c0_13 = arith.constant 0 : index
      %15 = vector.load %arg5[%c0_12, %c0_13] : memref<1x32xf32, #tpu.memory_space<vmem>>, vector<1x32xf32>
      %16 = vector.broadcast %15 : vector<1x32xf32> to vector<16x32xf32>
      %17 = arith.addf %14, %16 : vector<16x32xf32>
      %c0_14 = arith.constant 0 : index
      %c0_15 = arith.constant 0 : index
      %18 = vector.load %arg6[%c0_14, %c0_15] : memref<16x32xf32, #tpu.memory_space<vmem>>, vector<16x32xf32>
      tpu.vector_store %arg6[%c0_14, %c0_15], %17 {strides = array<i32>} : memref<16x32xf32, #tpu.memory_space<vmem>>, vector<16x32xf32>,
    } else {
    }
    return
  }
  func.func @transform_0(%arg0: i32, %arg1: i32, %arg2: i32) -> (i32, i32) {
    %c0_i32 = arith.constant 0 : i32
    return %arg0, %arg2 : i32, i32
  }
  func.func @transform_1(%arg0: i32, %arg1: i32, %arg2: i32) -> (i32, i32) {
    %c0_i32 = arith.constant 0 : i32
    return %arg2, %arg1 : i32, i32
  }
  func.func @transform_2(%arg0: i32, %arg1: i32, %arg2: i32) -> (i32, i32) {
    %c0_i32 = arith.constant 0 : i32
    %c0_i32_0 = arith.constant 0 : i32
    return %c0_i32, %arg1 : i32, i32
  }
  func.func @transform_3(%arg0: i32, %arg1: i32, %arg2: i32) -> (i32, i32) {
    %c0_i32 = arith.constant 0 : i32
    return %arg0, %arg1 : i32, i32
  }
}

module attributes {stable_mosaic.version = 11 : i64} {
  func.func @_ffn_resid_ln_kernel(%arg0: i32, %arg1: i32, %arg2: memref<16x32xf32, #tpu.memory_space<vmem>>, %arg3: memref<32x64xf32, #tpu.memory_space<vmem>>, %arg4: memref<1x64xf32, #tpu.memory_space<vmem>>, %arg5: memref<64x32xf32, #tpu.memory_space<vmem>>, %arg6: memref<1x32xf32, #tpu.memory_space<vmem>>, %arg7: memref<1x32xf32, #tpu.memory_space<vmem>>, %arg8: memref<1x32xf32, #tpu.memory_space<vmem>>, %arg9: memref<16x32xf32, #tpu.memory_space<vmem>>) attributes {dimension_semantics = [#tpu.dimension_semantics<parallel>, #tpu.dimension_semantics<arbitrary>], iteration_bounds = array<i64: 1, 1>, scalar_prefetch = 0 : i64, scratch_operands = 0 : i64, tpu.core_type = #tpu.core_type<tc>, window_params = [{transform_indices = @transform_0, window_bounds = array<i64: 16, 32>}, {transform_indices = @transform_1, window_bounds = array<i64: 32, 64>}, {transform_indices = @transform_2, window_bounds = array<i64: 1, 64>}, {transform_indices = @transform_3, window_bounds = array<i64: 64, 32>}, {pipeline_mode = #tpu.pipeline_mode<synchronous>, transform_indices = @transform_4, window_bounds = array<i64: 1, 32>}, {pipeline_mode = #tpu.pipeline_mode<synchronous>, transform_indices = @transform_5, window_bounds = array<i64: 1, 32>}, {pipeline_mode = #tpu.pipeline_mode<synchronous>, transform_indices = @transform_6, window_bounds = array<i64: 1, 32>}, {transform_indices = @transform_7, window_bounds = array<i64: 16, 32>}]} {
    %c0_i32 = arith.constant 0 : i32
    %0 = arith.cmpi eq, %arg1, %c0_i32 : i32
    %1 = arith.extui %0 : i1 to i32
    %c0_i32_0 = arith.constant 0 : i32
    %2 = arith.cmpi ne, %1, %c0_i32_0 : i32
    scf.if %2 {
      %cst_16 = arith.constant 0.000000e+00 : f32
      %23 = vector.broadcast %cst_16 : f32 to vector<16x32xf32>
      %c0_17 = arith.constant 0 : index
      %c0_18 = arith.constant 0 : index
      %24 = vector.load %arg9[%c0_17, %c0_18] : memref<16x32xf32, #tpu.memory_space<vmem>>, vector<16x32xf32>
      tpu.vector_store %arg9[%c0_17, %c0_18], %23 {strides = array<i32>} : memref<16x32xf32, #tpu.memory_space<vmem>>, vector<16x32xf32>,
    } else {
    }
    %c0 = arith.constant 0 : index
    %c0_1 = arith.constant 0 : index
    %3 = vector.load %arg2[%c0, %c0_1] : memref<16x32xf32, #tpu.memory_space<vmem>>, vector<16x32xf32>
    %4 = arith.truncf %3 : vector<16x32xf32> to vector<16x32xbf16>
    %c0_2 = arith.constant 0 : index
    %c0_3 = arith.constant 0 : index
    %5 = vector.load %arg3[%c0_2, %c0_3] : memref<32x64xf32, #tpu.memory_space<vmem>>, vector<32x64xf32>
    %6 = arith.truncf %5 : vector<32x64xf32> to vector<32x64xbf16>
    %cst = arith.constant dense<0.000000e+00> : vector<16x64xf32>
    %7 = tpu.matmul %4, %6, %cst {dimension_numbers = #tpu.dot_dimension_numbers<[1], [0], [0], [1], [0, 0, 1, 1], [], []>} : vector<16x32xbf16>, vector<32x64xbf16>, vector<16x64xf32> -> vector<16x64xf32>
    %c0_4 = arith.constant 0 : index
    %c0_5 = arith.constant 0 : index
    %8 = vector.load %arg4[%c0_4, %c0_5] : memref<1x64xf32, #tpu.memory_space<vmem>>, vector<1x64xf32>
    %9 = vector.broadcast %8 : vector<1x64xf32> to vector<16x64xf32>
    %10 = arith.addf %7, %9 : vector<16x64xf32>
    %cst_6 = arith.constant 0.000000e+00 : f32
    %11 = vector.broadcast %cst_6 : f32 to vector<16x64xf32>
    %12 = arith.maximumf %10, %11 : vector<16x64xf32>
    %c0_7 = arith.constant 0 : index
    %c0_8 = arith.constant 0 : index
    %13 = vector.load %arg9[%c0_7, %c0_8] : memref<16x32xf32, #tpu.memory_space<vmem>>, vector<16x32xf32>
    %14 = arith.truncf %12 : vector<16x64xf32> to vector<16x64xbf16>
    %c0_9 = arith.constant 0 : index
    %c0_10 = arith.constant 0 : index
    %15 = vector.load %arg5[%c0_9, %c0_10] : memref<64x32xf32, #tpu.memory_space<vmem>>, vector<64x32xf32>
    %16 = arith.truncf %15 : vector<64x32xf32> to vector<64x32xbf16>
    %cst_11 = arith.constant dense<0.000000e+00> : vector<16x32xf32>
    %17 = tpu.matmul %14, %16, %cst_11 {dimension_numbers = #tpu.dot_dimension_numbers<[1], [0], [0], [1], [0, 0, 1, 1], [], []>} : vector<16x64xbf16>, vector<64x32xbf16>, vector<16x32xf32> -> vector<16x32xf32>
    %18 = arith.addf %13, %17 : vector<16x32xf32>
    %c0_12 = arith.constant 0 : index
    %c0_13 = arith.constant 0 : index
    %19 = vector.load %arg9[%c0_12, %c0_13] : memref<16x32xf32, #tpu.memory_space<vmem>>, vector<16x32xf32>
    tpu.vector_store %arg9[%c0_12, %c0_13], %18 {strides = array<i32>} : memref<16x32xf32, #tpu.memory_space<vmem>>, vector<16x32xf32>,
    %c0_i32_14 = arith.constant 0 : i32
    %20 = arith.cmpi eq, %arg1, %c0_i32_14 : i32
    %21 = arith.extui %20 : i1 to i32
    %c0_i32_15 = arith.constant 0 : i32
    %22 = arith.cmpi ne, %21, %c0_i32_15 : i32
    scf.if %22 {
      %c0_16 = arith.constant 0 : index
      %c0_17 = arith.constant 0 : index
      %23 = vector.load %arg9[%c0_16, %c0_17] : memref<16x32xf32, #tpu.memory_space<vmem>>, vector<16x32xf32>
      %c0_18 = arith.constant 0 : index
      %c0_19 = arith.constant 0 : index
      %24 = vector.load %arg6[%c0_18, %c0_19] : memref<1x32xf32, #tpu.memory_space<vmem>>, vector<1x32xf32>
      %25 = vector.broadcast %24 : vector<1x32xf32> to vector<16x32xf32>
      %26 = arith.addf %23, %25 : vector<16x32xf32>
      %27 = arith.addf %26, %3 : vector<16x32xf32>
      %cst_20 = arith.constant dense<0.000000e+00> : vector<16xf32>
      %28 = vector.multi_reduction <add>, %27, %cst_20 [1] : vector<16x32xf32> to vector<16xf32>
      %29 = vector.shape_cast %28 : vector<16xf32> to vector<16x1xf32>
      %cst_21 = arith.constant 3.200000e+01 : f32
      %30 = vector.broadcast %cst_21 : f32 to vector<16x1xf32>
      %31 = arith.divf %29, %30 : vector<16x1xf32>
      %32 = vector.broadcast %31 : vector<16x1xf32> to vector<16x32xf32>
      %33 = arith.subf %27, %32 : vector<16x32xf32>
      %34 = arith.mulf %33, %33 : vector<16x32xf32>
      %cst_22 = arith.constant dense<0.000000e+00> : vector<16xf32>
      %35 = vector.multi_reduction <add>, %34, %cst_22 [1] : vector<16x32xf32> to vector<16xf32>
      %36 = vector.shape_cast %35 : vector<16xf32> to vector<16x1xf32>
      %cst_23 = arith.constant 3.200000e+01 : f32
      %37 = vector.broadcast %cst_23 : f32 to vector<16x1xf32>
      %38 = arith.divf %36, %37 : vector<16x1xf32>
      %39 = vector.broadcast %31 : vector<16x1xf32> to vector<16x32xf32>
      %40 = arith.subf %27, %39 : vector<16x32xf32>
      %cst_24 = arith.constant 9.99999974E-6 : f32
      %41 = vector.broadcast %cst_24 : f32 to vector<16x1xf32>
      %42 = arith.addf %38, %41 : vector<16x1xf32>
      %43 = math.rsqrt %42 : vector<16x1xf32>
      %44 = vector.broadcast %43 : vector<16x1xf32> to vector<16x32xf32>
      %45 = arith.mulf %40, %44 : vector<16x32xf32>
      %c0_25 = arith.constant 0 : index
      %c0_26 = arith.constant 0 : index
      %46 = vector.load %arg7[%c0_25, %c0_26] : memref<1x32xf32, #tpu.memory_space<vmem>>, vector<1x32xf32>
      %47 = vector.broadcast %46 : vector<1x32xf32> to vector<16x32xf32>
      %48 = arith.mulf %45, %47 : vector<16x32xf32>
      %c0_27 = arith.constant 0 : index
      %c0_28 = arith.constant 0 : index
      %49 = vector.load %arg8[%c0_27, %c0_28] : memref<1x32xf32, #tpu.memory_space<vmem>>, vector<1x32xf32>
      %50 = vector.broadcast %49 : vector<1x32xf32> to vector<16x32xf32>
      %51 = arith.addf %48, %50 : vector<16x32xf32>
      %c0_29 = arith.constant 0 : index
      %c0_30 = arith.constant 0 : index
      %52 = vector.load %arg9[%c0_29, %c0_30] : memref<16x32xf32, #tpu.memory_space<vmem>>, vector<16x32xf32>
      tpu.vector_store %arg9[%c0_29, %c0_30], %51 {strides = array<i32>} : memref<16x32xf32, #tpu.memory_space<vmem>>, vector<16x32xf32>,
    } else {
    }
    return
  }
  func.func @transform_0(%arg0: i32, %arg1: i32) -> (i32, i32) {
    %c0_i32 = arith.constant 0 : i32
    %c0_i32_0 = arith.constant 0 : i32
    return %arg0, %c0_i32 : i32, i32
  }
  func.func @transform_1(%arg0: i32, %arg1: i32) -> (i32, i32) {
    %c0_i32 = arith.constant 0 : i32
    %c0_i32_0 = arith.constant 0 : i32
    return %c0_i32, %arg1 : i32, i32
  }
  func.func @transform_2(%arg0: i32, %arg1: i32) -> (i32, i32) {
    %c0_i32 = arith.constant 0 : i32
    %c0_i32_0 = arith.constant 0 : i32
    return %c0_i32, %arg1 : i32, i32
  }
  func.func @transform_3(%arg0: i32, %arg1: i32) -> (i32, i32) {
    %c0_i32 = arith.constant 0 : i32
    %c0_i32_0 = arith.constant 0 : i32
    return %arg1, %c0_i32 : i32, i32
  }
  func.func @transform_4(%arg0: i32, %arg1: i32) -> (i32, i32) {
    %c0_i32 = arith.constant 0 : i32
    %c0_i32_0 = arith.constant 0 : i32
    %c0_i32_1 = arith.constant 0 : i32
    return %c0_i32, %c0_i32_0 : i32, i32
  }
  func.func @transform_5(%arg0: i32, %arg1: i32) -> (i32, i32) {
    %c0_i32 = arith.constant 0 : i32
    %c0_i32_0 = arith.constant 0 : i32
    %c0_i32_1 = arith.constant 0 : i32
    return %c0_i32, %c0_i32_0 : i32, i32
  }
  func.func @transform_6(%arg0: i32, %arg1: i32) -> (i32, i32) {
    %c0_i32 = arith.constant 0 : i32
    %c0_i32_0 = arith.constant 0 : i32
    %c0_i32_1 = arith.constant 0 : i32
    return %c0_i32, %c0_i32_0 : i32, i32
  }
  func.func @transform_7(%arg0: i32, %arg1: i32) -> (i32, i32) {
    %c0_i32 = arith.constant 0 : i32
    %c0_i32_0 = arith.constant 0 : i32
    return %arg0, %c0_i32 : i32, i32
  }
}

module attributes {stable_mosaic.version = 11 : i64} {
  func.func @_attention_kernel(%arg0: i32, %arg1: i32, %arg2: i32, %arg3: i32, %arg4: memref<1x1x8x8xf32, #tpu.memory_space<vmem>>, %arg5: memref<1x1x8x8xf32, #tpu.memory_space<vmem>>, %arg6: memref<1x1x8x8xf32, #tpu.memory_space<vmem>>, %arg7: memref<1x8x1xf32, #tpu.memory_space<vmem>>, %arg8: memref<1x1x8xf32, #tpu.memory_space<vmem>>, %arg9: memref<1x1x8x8xf32, #tpu.memory_space<vmem>>, %arg10: memref<8x1xf32, #tpu.memory_space<vmem>>, %arg11: memref<8x1xf32, #tpu.memory_space<vmem>>, %arg12: memref<8x8xf32, #tpu.memory_space<vmem>>) attributes {dimension_semantics = [#tpu.dimension_semantics<parallel>, #tpu.dimension_semantics<parallel>, #tpu.dimension_semantics<parallel>, #tpu.dimension_semantics<arbitrary>], iteration_bounds = array<i64: 2, 4, 1, 1>, scalar_prefetch = 0 : i64, scratch_operands = 3 : i64, tpu.core_type = #tpu.core_type<tc>, window_params = [{transform_indices = @transform_0, window_bounds = array<i64: 1, 1, 8, 8>}, {transform_indices = @transform_1, window_bounds = array<i64: 1, 1, 8, 8>}, {transform_indices = @transform_2, window_bounds = array<i64: 1, 1, 8, 8>}, {transform_indices = @transform_3, window_bounds = array<i64: 1, 8, 1>}, {transform_indices = @transform_4, window_bounds = array<i64: 1, 1, 8>}, {transform_indices = @transform_5, window_bounds = array<i64: 1, 1, 8, 8>}]} {
    %c0_i32 = arith.constant 0 : i32
    %0 = arith.cmpi eq, %arg3, %c0_i32 : i32
    %1 = arith.extui %0 : i1 to i32
    %c0_i32_0 = arith.constant 0 : i32
    %2 = arith.cmpi ne, %1, %c0_i32_0 : i32
    scf.if %2 {
      %cst_39 = arith.constant 0xFF800000 : f32
      %54 = vector.broadcast %cst_39 : f32 to vector<8x1xf32>
      %c0_40 = arith.constant 0 : index
      %c0_41 = arith.constant 0 : index
      %55 = vector.load %arg10[%c0_40, %c0_41] : memref<8x1xf32, #tpu.memory_space<vmem>>, vector<8x1xf32>
      tpu.vector_store %arg10[%c0_40, %c0_41], %54 {strides = array<i32>} : memref<8x1xf32, #tpu.memory_space<vmem>>, vector<8x1xf32>,
      %cst_42 = arith.constant 0.000000e+00 : f32
      %56 = vector.broadcast %cst_42 : f32 to vector<8x1xf32>
      %c0_43 = arith.constant 0 : index
      %c0_44 = arith.constant 0 : index
      %57 = vector.load %arg11[%c0_43, %c0_44] : memref<8x1xf32, #tpu.memory_space<vmem>>, vector<8x1xf32>
      tpu.vector_store %arg11[%c0_43, %c0_44], %56 {strides = array<i32>} : memref<8x1xf32, #tpu.memory_space<vmem>>, vector<8x1xf32>,
      %cst_45 = arith.constant 0.000000e+00 : f32
      %58 = vector.broadcast %cst_45 : f32 to vector<8x8xf32>
      %c0_46 = arith.constant 0 : index
      %c0_47 = arith.constant 0 : index
      %59 = vector.load %arg12[%c0_46, %c0_47] : memref<8x8xf32, #tpu.memory_space<vmem>>, vector<8x8xf32>
      tpu.vector_store %arg12[%c0_46, %c0_47], %58 {strides = array<i32>} : memref<8x8xf32, #tpu.memory_space<vmem>>, vector<8x8xf32>,
    } else {
    }
    %c0 = arith.constant 0 : index
    %c0_1 = arith.constant 0 : index
    %c0_2 = arith.constant 0 : index
    %c0_3 = arith.constant 0 : index
    %3 = vector.load %arg4[%c0, %c0_1, %c0_2, %c0_3] : memref<1x1x8x8xf32, #tpu.memory_space<vmem>>, vector<1x1x8x8xf32>
    %4 = vector.shape_cast %3 : vector<1x1x8x8xf32> to vector<8x8xf32>
    %cst = arith.constant 0.353553385 : f32
    %5 = vector.broadcast %cst : f32 to vector<8x8xf32>
    %6 = arith.mulf %4, %5 : vector<8x8xf32>
    %7 = arith.truncf %6 : vector<8x8xf32> to vector<8x8xbf16>
    %c0_4 = arith.constant 0 : index
    %c0_5 = arith.constant 0 : index
    %c0_6 = arith.constant 0 : index
    %c0_7 = arith.constant 0 : index
    %8 = vector.load %arg5[%c0_4, %c0_5, %c0_6, %c0_7] : memref<1x1x8x8xf32, #tpu.memory_space<vmem>>, vector<1x1x8x8xf32>
    %9 = vector.shape_cast %8 : vector<1x1x8x8xf32> to vector<8x8xf32>
    %10 = arith.truncf %9 : vector<8x8xf32> to vector<8x8xbf16>
    %cst_8 = arith.constant dense<0.000000e+00> : vector<8x8xf32>
    %11 = tpu.matmul %7, %10, %cst_8 {dimension_numbers = #tpu.dot_dimension_numbers<[1], [1], [0], [0], [0, 0, 1, 0], [], []>} : vector<8x8xbf16>, vector<8x8xbf16>, vector<8x8xf32> -> vector<8x8xf32>
    %c0_9 = arith.constant 0 : index
    %c0_10 = arith.constant 0 : index
    %c0_11 = arith.constant 0 : index
    %12 = vector.load %arg7[%c0_9, %c0_10, %c0_11] : memref<1x8x1xf32, #tpu.memory_space<vmem>>, vector<1x8x1xf32>
    %13 = vector.shape_cast %12 : vector<1x8x1xf32> to vector<8x1xf32>
    %cst_12 = arith.constant 0.000000e+00 : f32
    %14 = vector.broadcast %cst_12 : f32 to vector<8x1xf32>
    %15 = arith.cmpf ogt, %13, %14 : vector<8x1xf32>
    %c0_13 = arith.constant 0 : index
    %c0_14 = arith.constant 0 : index
    %c0_15 = arith.constant 0 : index
    %16 = vector.load %arg8[%c0_13, %c0_14, %c0_15] : memref<1x1x8xf32, #tpu.memory_space<vmem>>, vector<1x1x8xf32>
    %17 = vector.shape_cast %16 : vector<1x1x8xf32> to vector<1x8xf32>
    %cst_16 = arith.constant 0.000000e+00 : f32
    %18 = vector.broadcast %cst_16 : f32 to vector<1x8xf32>
    %19 = arith.cmpf ogt, %17, %18 : vector<1x8xf32>
    %20 = vector.broadcast %15 : vector<8x1xi1> to vector<8x8xi1>
    %21 = vector.broadcast %19 : vector<1x8xi1> to vector<8x8xi1>
    %22 = arith.andi %20, %21 : vector<8x8xi1>
    %cst_17 = arith.constant -1.000000e+09 : f32
    %23 = vector.broadcast %cst_17 : f32 to vector<8x8xf32>
    %24 = arith.select %22, %11, %23 : vector<8x8xi1>, vector<8x8xf32>
    %c0_18 = arith.constant 0 : index
    %c0_19 = arith.constant 0 : index
    %25 = vector.load %arg10[%c0_18, %c0_19] : memref<8x1xf32, #tpu.memory_space<vmem>>, vector<8x1xf32>
    %cst_20 = arith.constant dense<0xFF800000> : vector<8xf32>
    %26 = vector.multi_reduction <maximumf>, %24, %cst_20 [1] : vector<8x8xf32> to vector<8xf32>
    %27 = vector.shape_cast %26 : vector<8xf32> to vector<8x1xf32>
    %28 = arith.maximumf %25, %27 : vector<8x1xf32>
    %29 = arith.subf %25, %28 : vector<8x1xf32>
    %30 = math.exp %29 : vector<8x1xf32>
    %31 = vector.broadcast %28 : vector<8x1xf32> to vector<8x8xf32>
    %32 = arith.subf %24, %31 : vector<8x8xf32>
    %33 = math.exp %32 : vector<8x8xf32>
    %c0_21 = arith.constant 0 : index
    %c0_22 = arith.constant 0 : index
    %34 = vector.load %arg11[%c0_21, %c0_22] : memref<8x1xf32, #tpu.memory_space<vmem>>, vector<8x1xf32>
    %35 = arith.mulf %30, %34 : vector<8x1xf32>
    %cst_23 = arith.constant dense<0.000000e+00> : vector<8xf32>
    %36 = vector.multi_reduction <add>, %33, %cst_23 [1] : vector<8x8xf32> to vector<8xf32>
    %37 = vector.shape_cast %36 : vector<8xf32> to vector<8x1xf32>
    %38 = arith.addf %35, %37 : vector<8x1xf32>
    %c0_24 = arith.constant 0 : index
    %c0_25 = arith.constant 0 : index
    %39 = vector.load %arg11[%c0_24, %c0_25] : memref<8x1xf32, #tpu.memory_space<vmem>>, vector<8x1xf32>
    tpu.vector_store %arg11[%c0_24, %c0_25], %38 {strides = array<i32>} : memref<8x1xf32, #tpu.memory_space<vmem>>, vector<8x1xf32>,
    %c0_26 = arith.constant 0 : index
    %c0_27 = arith.constant 0 : index
    %40 = vector.load %arg12[%c0_26, %c0_27] : memref<8x8xf32, #tpu.memory_space<vmem>>, vector<8x8xf32>
    %41 = vector.broadcast %30 : vector<8x1xf32> to vector<8x8xf32>
    %42 = arith.mulf %41, %40 : vector<8x8xf32>
    %43 = arith.truncf %33 : vector<8x8xf32> to vector<8x8xbf16>
    %c0_28 = arith.constant 0 : index
    %c0_29 = arith.constant 0 : index
    %c0_30 = arith.constant 0 : index
    %c0_31 = arith.constant 0 : index
    %44 = vector.load %arg6[%c0_28, %c0_29, %c0_30, %c0_31] : memref<1x1x8x8xf32, #tpu.memory_space<vmem>>, vector<1x1x8x8xf32>
    %45 = vector.shape_cast %44 : vector<1x1x8x8xf32> to vector<8x8xf32>
    %46 = arith.truncf %45 : vector<8x8xf32> to vector<8x8xbf16>
    %cst_32 = arith.constant dense<0.000000e+00> : vector<8x8xf32>
    %47 = tpu.matmul %43, %46, %cst_32 {dimension_numbers = #tpu.dot_dimension_numbers<[1], [0], [0], [1], [0, 0, 1, 1], [], []>} : vector<8x8xbf16>, vector<8x8xbf16>, vector<8x8xf32> -> vector<8x8xf32>
    %48 = arith.addf %42, %47 : vector<8x8xf32>
    %c0_33 = arith.constant 0 : index
    %c0_34 = arith.constant 0 : index
    %49 = vector.load %arg12[%c0_33, %c0_34] : memref<8x8xf32, #tpu.memory_space<vmem>>, vector<8x8xf32>
    tpu.vector_store %arg12[%c0_33, %c0_34], %48 {strides = array<i32>} : memref<8x8xf32, #tpu.memory_space<vmem>>, vector<8x8xf32>,
    %c0_35 = arith.constant 0 : index
    %c0_36 = arith.constant 0 : index
    %50 = vector.load %arg10[%c0_35, %c0_36] : memref<8x1xf32, #tpu.memory_space<vmem>>, vector<8x1xf32>
    tpu.vector_store %arg10[%c0_35, %c0_36], %28 {strides = array<i32>} : memref<8x1xf32, #tpu.memory_space<vmem>>, vector<8x1xf32>,
    %c0_i32_37 = arith.constant 0 : i32
    %51 = arith.cmpi eq, %arg3, %c0_i32_37 : i32
    %52 = arith.extui %51 : i1 to i32
    %c0_i32_38 = arith.constant 0 : i32
    %53 = arith.cmpi ne, %52, %c0_i32_38 : i32
    scf.if %53 {
      %c0_39 = arith.constant 0 : index
      %c0_40 = arith.constant 0 : index
      %54 = vector.load %arg12[%c0_39, %c0_40] : memref<8x8xf32, #tpu.memory_space<vmem>>, vector<8x8xf32>
      %c0_41 = arith.constant 0 : index
      %c0_42 = arith.constant 0 : index
      %55 = vector.load %arg11[%c0_41, %c0_42] : memref<8x1xf32, #tpu.memory_space<vmem>>, vector<8x1xf32>
      %56 = vector.broadcast %55 : vector<8x1xf32> to vector<8x8xf32>
      %57 = arith.divf %54, %56 : vector<8x8xf32>
      %c0_43 = arith.constant 0 : index
      %c0_44 = arith.constant 0 : index
      %c0_45 = arith.constant 0 : index
      %c0_46 = arith.constant 0 : index
      %58 = vector.load %arg9[%c0_43, %c0_44, %c0_45, %c0_46] : memref<1x1x8x8xf32, #tpu.memory_space<vmem>>, vector<1x1x8x8xf32>
      %59 = vector.shape_cast %58 : vector<1x1x8x8xf32> to vector<8x8xf32>
      %60 = vector.shape_cast %57 : vector<8x8xf32> to vector<1x1x8x8xf32>
      tpu.vector_store %arg9[%c0_43, %c0_44, %c0_45, %c0_46], %60 {strides = array<i32>} : memref<1x1x8x8xf32, #tpu.memory_space<vmem>>, vector<1x1x8x8xf32>,
    } else {
    }
    return
  }
  func.func @transform_0(%arg0: i32, %arg1: i32, %arg2: i32, %arg3: i32) -> (i32, i32, i32, i32) {
    %c0_i32 = arith.constant 0 : i32
    %c0_i32_0 = arith.constant 0 : i32
    return %arg0, %arg1, %arg2, %c0_i32 : i32, i32, i32, i32
  }
  func.func @transform_1(%arg0: i32, %arg1: i32, %arg2: i32, %arg3: i32) -> (i32, i32, i32, i32) {
    %c0_i32 = arith.constant 0 : i32
    %c0_i32_0 = arith.constant 0 : i32
    return %arg0, %arg1, %arg3, %c0_i32 : i32, i32, i32, i32
  }
  func.func @transform_2(%arg0: i32, %arg1: i32, %arg2: i32, %arg3: i32) -> (i32, i32, i32, i32) {
    %c0_i32 = arith.constant 0 : i32
    %c0_i32_0 = arith.constant 0 : i32
    return %arg0, %arg1, %arg3, %c0_i32 : i32, i32, i32, i32
  }
  func.func @transform_3(%arg0: i32, %arg1: i32, %arg2: i32, %arg3: i32) -> (i32, i32, i32) {
    %c0_i32 = arith.constant 0 : i32
    %c0_i32_0 = arith.constant 0 : i32
    return %arg0, %arg2, %c0_i32 : i32, i32, i32
  }
  func.func @transform_4(%arg0: i32, %arg1: i32, %arg2: i32, %arg3: i32) -> (i32, i32, i32) {
    %c0_i32 = arith.constant 0 : i32
    %c0_i32_0 = arith.constant 0 : i32
    return %arg0, %c0_i32, %arg3 : i32, i32, i32
  }
  func.func @transform_5(%arg0: i32, %arg1: i32, %arg2: i32, %arg3: i32) -> (i32, i32, i32, i32) {
    %c0_i32 = arith.constant 0 : i32
    %c0_i32_0 = arith.constant 0 : i32
    return %arg0, %arg1, %arg2, %c0_i32 : i32, i32, i32, i32
  }
}

module attributes {stable_mosaic.version = 11 : i64} {
  func.func @_linear_kernel(%arg0: i32, %arg1: i32, %arg2: i32, %arg3: memref<16x32xf32, #tpu.memory_space<vmem>>, %arg4: memref<32x64xf32, #tpu.memory_space<vmem>>, %arg5: memref<1x64xf32, #tpu.memory_space<vmem>>, %arg6: memref<16x64xf32, #tpu.memory_space<vmem>>) attributes {dimension_semantics = [#tpu.dimension_semantics<parallel>, #tpu.dimension_semantics<parallel>, #tpu.dimension_semantics<arbitrary>], iteration_bounds = array<i64: 1, 1, 1>, scalar_prefetch = 0 : i64, scratch_operands = 0 : i64, tpu.core_type = #tpu.core_type<tc>, window_params = [{transform_indices = @transform_0, window_bounds = array<i64: 16, 32>}, {transform_indices = @transform_1, window_bounds = array<i64: 32, 64>}, {transform_indices = @transform_2, window_bounds = array<i64: 1, 64>}, {transform_indices = @transform_3, window_bounds = array<i64: 16, 64>}]} {
    %c0_i32 = arith.constant 0 : i32
    %0 = arith.cmpi eq, %arg2, %c0_i32 : i32
    %1 = arith.extui %0 : i1 to i32
    %c0_i32_0 = arith.constant 0 : i32
    %2 = arith.cmpi ne, %1, %c0_i32_0 : i32
    scf.if %2 {
      %cst_10 = arith.constant 0.000000e+00 : f32
      %14 = vector.broadcast %cst_10 : f32 to vector<16x64xf32>
      %c0_11 = arith.constant 0 : index
      %c0_12 = arith.constant 0 : index
      %15 = vector.load %arg6[%c0_11, %c0_12] : memref<16x64xf32, #tpu.memory_space<vmem>>, vector<16x64xf32>
      tpu.vector_store %arg6[%c0_11, %c0_12], %14 {strides = array<i32>} : memref<16x64xf32, #tpu.memory_space<vmem>>, vector<16x64xf32>,
    } else {
    }
    %c0 = arith.constant 0 : index
    %c0_1 = arith.constant 0 : index
    %3 = vector.load %arg6[%c0, %c0_1] : memref<16x64xf32, #tpu.memory_space<vmem>>, vector<16x64xf32>
    %c0_2 = arith.constant 0 : index
    %c0_3 = arith.constant 0 : index
    %4 = vector.load %arg3[%c0_2, %c0_3] : memref<16x32xf32, #tpu.memory_space<vmem>>, vector<16x32xf32>
    %5 = arith.truncf %4 : vector<16x32xf32> to vector<16x32xbf16>
    %c0_4 = arith.constant 0 : index
    %c0_5 = arith.constant 0 : index
    %6 = vector.load %arg4[%c0_4, %c0_5] : memref<32x64xf32, #tpu.memory_space<vmem>>, vector<32x64xf32>
    %7 = arith.truncf %6 : vector<32x64xf32> to vector<32x64xbf16>
    %cst = arith.constant dense<0.000000e+00> : vector<16x64xf32>
    %8 = tpu.matmul %5, %7, %cst {dimension_numbers = #tpu.dot_dimension_numbers<[1], [0], [0], [1], [0, 0, 1, 1], [], []>} : vector<16x32xbf16>, vector<32x64xbf16>, vector<16x64xf32> -> vector<16x64xf32>
    %9 = arith.addf %3, %8 : vector<16x64xf32>
    %c0_6 = arith.constant 0 : index
    %c0_7 = arith.constant 0 : index
    %10 = vector.load %arg6[%c0_6, %c0_7] : memref<16x64xf32, #tpu.memory_space<vmem>>, vector<16x64xf32>
    tpu.vector_store %arg6[%c0_6, %c0_7], %9 {strides = array<i32>} : memref<16x64xf32, #tpu.memory_space<vmem>>, vector<16x64xf32>,
    %c0_i32_8 = arith.constant 0 : i32
    %11 = arith.cmpi eq, %arg2, %c0_i32_8 : i32
    %12 = arith.extui %11 : i1 to i32
    %c0_i32_9 = arith.constant 0 : i32
    %13 = arith.cmpi ne, %12, %c0_i32_9 : i32
    scf.if %13 {
      %c0_10 = arith.constant 0 : index
      %c0_11 = arith.constant 0 : index
      %14 = vector.load %arg6[%c0_10, %c0_11] : memref<16x64xf32, #tpu.memory_space<vmem>>, vector<16x64xf32>
      %c0_12 = arith.constant 0 : index
      %c0_13 = arith.constant 0 : index
      %15 = vector.load %arg5[%c0_12, %c0_13] : memref<1x64xf32, #tpu.memory_space<vmem>>, vector<1x64xf32>
      %16 = vector.broadcast %15 : vector<1x64xf32> to vector<16x64xf32>
      %17 = arith.addf %14, %16 : vector<16x64xf32>
      %c0_14 = arith.constant 0 : index
      %c0_15 = arith.constant 0 : index
      %18 = vector.load %arg6[%c0_14, %c0_15] : memref<16x64xf32, #tpu.memory_space<vmem>>, vector<16x64xf32>
      tpu.vector_store %arg6[%c0_14, %c0_15], %17 {strides = array<i32>} : memref<16x64xf32, #tpu.memory_space<vmem>>, vector<16x64xf32>,
    } else {
    }
    return
  }
  func.func @transform_0(%arg0: i32, %arg1: i32, %arg2: i32) -> (i32, i32) {
    %c0_i32 = arith.constant 0 : i32
    return %arg0, %arg2 : i32, i32
  }
  func.func @transform_1(%arg0: i32, %arg1: i32, %arg2: i32) -> (i32, i32) {
    %c0_i32 = arith.constant 0 : i32
    return %arg2, %arg1 : i32, i32
  }
  func.func @transform_2(%arg0: i32, %arg1: i32, %arg2: i32) -> (i32, i32) {
    %c0_i32 = arith.constant 0 : i32
    %c0_i32_0 = arith.constant 0 : i32
    return %c0_i32, %arg1 : i32, i32
  }
  func.func @transform_3(%arg0: i32, %arg1: i32, %arg2: i32) -> (i32, i32) {
    %c0_i32 = arith.constant 0 : i32
    return %arg0, %arg1 : i32, i32
  }
}

module attributes {stable_mosaic.version = 11 : i64} {
  func.func @_gen_logits_lse_kernel(%arg0: i32, %arg1: i32, %arg2: i32, %arg3: memref<16x32xf32, #tpu.memory_space<vmem>>, %arg4: memref<32x64xf32, #tpu.memory_space<vmem>>, %arg5: memref<1x64xf32, #tpu.memory_space<vmem>>, %arg6: memref<16x64xf32, #tpu.memory_space<vmem>>, %arg7: memref<16x1xf32, #tpu.memory_space<vmem>>, %arg8: memref<16x1xf32, #tpu.memory_space<vmem>>, %arg9: memref<16x1xf32, #tpu.memory_space<vmem>>) attributes {dimension_semantics = [#tpu.dimension_semantics<parallel>, #tpu.dimension_semantics<arbitrary>, #tpu.dimension_semantics<arbitrary>], iteration_bounds = array<i64: 1, 1, 1>, scalar_prefetch = 0 : i64, scratch_operands = 2 : i64, tpu.core_type = #tpu.core_type<tc>, window_params = [{transform_indices = @transform_0, window_bounds = array<i64: 16, 32>}, {transform_indices = @transform_1, window_bounds = array<i64: 32, 64>}, {transform_indices = @transform_2, window_bounds = array<i64: 1, 64>}, {transform_indices = @transform_3, window_bounds = array<i64: 16, 64>}, {transform_indices = @transform_4, window_bounds = array<i64: 16, 1>}]} {
    %c0_i32 = arith.constant 0 : i32
    %0 = arith.cmpi eq, %arg1, %c0_i32 : i32
    %c0_i32_0 = arith.constant 0 : i32
    %1 = arith.cmpi eq, %arg2, %c0_i32_0 : i32
    %2 = arith.andi %0, %1 : i1
    %3 = arith.extui %2 : i1 to i32
    %c0_i32_1 = arith.constant 0 : i32
    %4 = arith.cmpi ne, %3, %c0_i32_1 : i32
    scf.if %4 {
      %cst_16 = arith.constant 0xFF800000 : f32
      %24 = vector.broadcast %cst_16 : f32 to vector<16x1xf32>
      %c0_17 = arith.constant 0 : index
      %c0_18 = arith.constant 0 : index
      %25 = vector.load %arg8[%c0_17, %c0_18] : memref<16x1xf32, #tpu.memory_space<vmem>>, vector<16x1xf32>
      tpu.vector_store %arg8[%c0_17, %c0_18], %24 {strides = array<i32>} : memref<16x1xf32, #tpu.memory_space<vmem>>, vector<16x1xf32>,
      %cst_19 = arith.constant 0.000000e+00 : f32
      %26 = vector.broadcast %cst_19 : f32 to vector<16x1xf32>
      %c0_20 = arith.constant 0 : index
      %c0_21 = arith.constant 0 : index
      %27 = vector.load %arg9[%c0_20, %c0_21] : memref<16x1xf32, #tpu.memory_space<vmem>>, vector<16x1xf32>
      tpu.vector_store %arg9[%c0_20, %c0_21], %26 {strides = array<i32>} : memref<16x1xf32, #tpu.memory_space<vmem>>, vector<16x1xf32>,
    } else {
    }
    %c0_i32_2 = arith.constant 0 : i32
    %5 = arith.cmpi eq, %arg2, %c0_i32_2 : i32
    %6 = arith.extui %5 : i1 to i32
    %c0_i32_3 = arith.constant 0 : i32
    %7 = arith.cmpi ne, %6, %c0_i32_3 : i32
    scf.if %7 {
      %cst_16 = arith.constant 0.000000e+00 : f32
      %24 = vector.broadcast %cst_16 : f32 to vector<16x64xf32>
      %c0_17 = arith.constant 0 : index
      %c0_18 = arith.constant 0 : index
      %25 = vector.load %arg6[%c0_17, %c0_18] : memref<16x64xf32, #tpu.memory_space<vmem>>, vector<16x64xf32>
      tpu.vector_store %arg6[%c0_17, %c0_18], %24 {strides = array<i32>} : memref<16x64xf32, #tpu.memory_space<vmem>>, vector<16x64xf32>,
    } else {
    }
    %c0 = arith.constant 0 : index
    %c0_4 = arith.constant 0 : index
    %8 = vector.load %arg6[%c0, %c0_4] : memref<16x64xf32, #tpu.memory_space<vmem>>, vector<16x64xf32>
    %c0_5 = arith.constant 0 : index
    %c0_6 = arith.constant 0 : index
    %9 = vector.load %arg3[%c0_5, %c0_6] : memref<16x32xf32, #tpu.memory_space<vmem>>, vector<16x32xf32>
    %10 = arith.truncf %9 : vector<16x32xf32> to vector<16x32xbf16>
    %c0_7 = arith.constant 0 : index
    %c0_8 = arith.constant 0 : index
    %11 = vector.load %arg4[%c0_7, %c0_8] : memref<32x64xf32, #tpu.memory_space<vmem>>, vector<32x64xf32>
    %12 = arith.truncf %11 : vector<32x64xf32> to vector<32x64xbf16>
    %cst = arith.constant dense<0.000000e+00> : vector<16x64xf32>
    %13 = tpu.matmul %10, %12, %cst {dimension_numbers = #tpu.dot_dimension_numbers<[1], [0], [0], [1], [0, 0, 1, 1], [], []>} : vector<16x32xbf16>, vector<32x64xbf16>, vector<16x64xf32> -> vector<16x64xf32>
    %14 = arith.addf %8, %13 : vector<16x64xf32>
    %c0_9 = arith.constant 0 : index
    %c0_10 = arith.constant 0 : index
    %15 = vector.load %arg6[%c0_9, %c0_10] : memref<16x64xf32, #tpu.memory_space<vmem>>, vector<16x64xf32>
    tpu.vector_store %arg6[%c0_9, %c0_10], %14 {strides = array<i32>} : memref<16x64xf32, #tpu.memory_space<vmem>>, vector<16x64xf32>,
    %c0_i32_11 = arith.constant 0 : i32
    %16 = arith.cmpi eq, %arg2, %c0_i32_11 : i32
    %17 = arith.extui %16 : i1 to i32
    %c0_i32_12 = arith.constant 0 : i32
    %18 = arith.cmpi ne, %17, %c0_i32_12 : i32
    scf.if %18 {
      %c0_16 = arith.constant 0 : index
      %c0_17 = arith.constant 0 : index
      %24 = vector.load %arg6[%c0_16, %c0_17] : memref<16x64xf32, #tpu.memory_space<vmem>>, vector<16x64xf32>
      %c0_18 = arith.constant 0 : index
      %c0_19 = arith.constant 0 : index
      %25 = vector.load %arg5[%c0_18, %c0_19] : memref<1x64xf32, #tpu.memory_space<vmem>>, vector<1x64xf32>
      %26 = vector.broadcast %25 : vector<1x64xf32> to vector<16x64xf32>
      %27 = arith.addf %24, %26 : vector<16x64xf32>
      %c0_20 = arith.constant 0 : index
      %c0_21 = arith.constant 0 : index
      %28 = vector.load %arg6[%c0_20, %c0_21] : memref<16x64xf32, #tpu.memory_space<vmem>>, vector<16x64xf32>
      tpu.vector_store %arg6[%c0_20, %c0_21], %27 {strides = array<i32>} : memref<16x64xf32, #tpu.memory_space<vmem>>, vector<16x64xf32>,
      %c0_22 = arith.constant 0 : index
      %c0_23 = arith.constant 0 : index
      %29 = vector.load %arg8[%c0_22, %c0_23] : memref<16x1xf32, #tpu.memory_space<vmem>>, vector<16x1xf32>
      %cst_24 = arith.constant dense<0xFF800000> : vector<16xf32>
      %30 = vector.multi_reduction <maximumf>, %27, %cst_24 [1] : vector<16x64xf32> to vector<16xf32>
      %31 = vector.shape_cast %30 : vector<16xf32> to vector<16x1xf32>
      %32 = arith.maximumf %29, %31 : vector<16x1xf32>
      %c0_25 = arith.constant 0 : index
      %c0_26 = arith.constant 0 : index
      %33 = vector.load %arg9[%c0_25, %c0_26] : memref<16x1xf32, #tpu.memory_space<vmem>>, vector<16x1xf32>
      %c0_27 = arith.constant 0 : index
      %c0_28 = arith.constant 0 : index
      %34 = vector.load %arg8[%c0_27, %c0_28] : memref<16x1xf32, #tpu.memory_space<vmem>>, vector<16x1xf32>
      %35 = arith.subf %34, %32 : vector<16x1xf32>
      %36 = math.exp %35 : vector<16x1xf32>
      %37 = arith.mulf %33, %36 : vector<16x1xf32>
      %38 = vector.broadcast %32 : vector<16x1xf32> to vector<16x64xf32>
      %39 = arith.subf %27, %38 : vector<16x64xf32>
      %40 = math.exp %39 : vector<16x64xf32>
      %cst_29 = arith.constant dense<0.000000e+00> : vector<16xf32>
      %41 = vector.multi_reduction <add>, %40, %cst_29 [1] : vector<16x64xf32> to vector<16xf32>
      %42 = vector.shape_cast %41 : vector<16xf32> to vector<16x1xf32>
      %43 = arith.addf %37, %42 : vector<16x1xf32>
      %c0_30 = arith.constant 0 : index
      %c0_31 = arith.constant 0 : index
      %44 = vector.load %arg9[%c0_30, %c0_31] : memref<16x1xf32, #tpu.memory_space<vmem>>, vector<16x1xf32>
      tpu.vector_store %arg9[%c0_30, %c0_31], %43 {strides = array<i32>} : memref<16x1xf32, #tpu.memory_space<vmem>>, vector<16x1xf32>,
      %c0_32 = arith.constant 0 : index
      %c0_33 = arith.constant 0 : index
      %45 = vector.load %arg8[%c0_32, %c0_33] : memref<16x1xf32, #tpu.memory_space<vmem>>, vector<16x1xf32>
      tpu.vector_store %arg8[%c0_32, %c0_33], %32 {strides = array<i32>} : memref<16x1xf32, #tpu.memory_space<vmem>>, vector<16x1xf32>,
    } else {
    }
    %c0_i32_13 = arith.constant 0 : i32
    %19 = arith.cmpi eq, %arg2, %c0_i32_13 : i32
    %c0_i32_14 = arith.constant 0 : i32
    %20 = arith.cmpi eq, %arg1, %c0_i32_14 : i32
    %21 = arith.andi %19, %20 : i1
    %22 = arith.extui %21 : i1 to i32
    %c0_i32_15 = arith.constant 0 : i32
    %23 = arith.cmpi ne, %22, %c0_i32_15 : i32
    scf.if %23 {
      %c0_16 = arith.constant 0 : index
      %c0_17 = arith.constant 0 : index
      %24 = vector.load %arg8[%c0_16, %c0_17] : memref<16x1xf32, #tpu.memory_space<vmem>>, vector<16x1xf32>
      %c0_18 = arith.constant 0 : index
      %c0_19 = arith.constant 0 : index
      %25 = vector.load %arg9[%c0_18, %c0_19] : memref<16x1xf32, #tpu.memory_space<vmem>>, vector<16x1xf32>
      %26 = math.log %25 : vector<16x1xf32>
      %27 = arith.addf %24, %26 : vector<16x1xf32>
      %c0_20 = arith.constant 0 : index
      %c0_21 = arith.constant 0 : index
      %28 = vector.load %arg7[%c0_20, %c0_21] : memref<16x1xf32, #tpu.memory_space<vmem>>, vector<16x1xf32>
      tpu.vector_store %arg7[%c0_20, %c0_21], %27 {strides = array<i32>} : memref<16x1xf32, #tpu.memory_space<vmem>>, vector<16x1xf32>,
    } else {
    }
    return
  }
  func.func @transform_0(%arg0: i32, %arg1: i32, %arg2: i32) -> (i32, i32) {
    %c0_i32 = arith.constant 0 : i32
    return %arg0, %arg2 : i32, i32
  }
  func.func @transform_1(%arg0: i32, %arg1: i32, %arg2: i32) -> (i32, i32) {
    %c0_i32 = arith.constant 0 : i32
    return %arg2, %arg1 : i32, i32
  }
  func.func @transform_2(%arg0: i32, %arg1: i32, %arg2: i32) -> (i32, i32) {
    %c0_i32 = arith.constant 0 : i32
    %c0_i32_0 = arith.constant 0 : i32
    return %c0_i32, %arg1 : i32, i32
  }
  func.func @transform_3(%arg0: i32, %arg1: i32, %arg2: i32) -> (i32, i32) {
    %c0_i32 = arith.constant 0 : i32
    return %arg0, %arg1 : i32, i32
  }
  func.func @transform_4(%arg0: i32, %arg1: i32, %arg2: i32) -> (i32, i32) {
    %c0_i32 = arith.constant 0 : i32
    %c0_i32_0 = arith.constant 0 : i32
    return %arg0, %c0_i32 : i32, i32
  }
}

module attributes {stable_mosaic.version = 11 : i64} {
  func.func @_sub_lse_kernel(%arg0: i32, %arg1: i32, %arg2: memref<16x64xf32, #tpu.memory_space<vmem>>, %arg3: memref<16x1xf32, #tpu.memory_space<vmem>>, %arg4: memref<16x64xf32, #tpu.memory_space<vmem>>) attributes {dimension_semantics = [#tpu.dimension_semantics<parallel>, #tpu.dimension_semantics<parallel>], iteration_bounds = array<i64: 1, 1>, scalar_prefetch = 0 : i64, scratch_operands = 0 : i64, tpu.core_type = #tpu.core_type<tc>, window_params = [{transform_indices = @transform_0, window_bounds = array<i64: 16, 64>}, {transform_indices = @transform_1, window_bounds = array<i64: 16, 1>}, {transform_indices = @transform_2, window_bounds = array<i64: 16, 64>}]} {
    %c0 = arith.constant 0 : index
    %c0_0 = arith.constant 0 : index
    %0 = vector.load %arg2[%c0, %c0_0] : memref<16x64xf32, #tpu.memory_space<vmem>>, vector<16x64xf32>
    %c0_1 = arith.constant 0 : index
    %c0_2 = arith.constant 0 : index
    %1 = vector.load %arg3[%c0_1, %c0_2] : memref<16x1xf32, #tpu.memory_space<vmem>>, vector<16x1xf32>
    %2 = vector.broadcast %1 : vector<16x1xf32> to vector<16x64xf32>
    %3 = arith.subf %0, %2 : vector<16x64xf32>
    %c0_3 = arith.constant 0 : index
    %c0_4 = arith.constant 0 : index
    %4 = vector.load %arg4[%c0_3, %c0_4] : memref<16x64xf32, #tpu.memory_space<vmem>>, vector<16x64xf32>
    tpu.vector_store %arg4[%c0_3, %c0_4], %3 {strides = array<i32>} : memref<16x64xf32, #tpu.memory_space<vmem>>, vector<16x64xf32>,
    return
  }
  func.func @transform_0(%arg0: i32, %arg1: i32) -> (i32, i32) {
    %c0_i32 = arith.constant 0 : i32
    return %arg0, %arg1 : i32, i32
  }
  func.func @transform_1(%arg0: i32, %arg1: i32) -> (i32, i32) {
    %c0_i32 = arith.constant 0 : i32
    %c0_i32_0 = arith.constant 0 : i32
    return %arg0, %c0_i32 : i32, i32
  }
  func.func @transform_2(%arg0: i32, %arg1: i32) -> (i32, i32) {
    %c0_i32 = arith.constant 0 : i32
    return %arg0, %arg1 : i32, i32
  }
}

</mosaic_0001>

<bundles_post_ra>
// kernel: transformer_forward.21
= control target key start
LH: loop header
LB: loop body
LE: loop exit
PB: predicated region body
PF: predicated region fallthrough
CT: control target
= control target key end

     0   :  { %vm19_vm0 = vcmask 261120   ;;  %v117_v0 = vmov 0.0   ;;  %vm118_vm1 = vmmov 0   ;;  %s197_s1 = inlined_call_operand.vmem [shape: f32[32,32], index: 1, kind: input, shape index: {}]   ;;  %s198_s3 = inlined_call_operand.vmem [shape: f32[16,32], index: 3, kind: output, shape index: {}]   ;;  %s199_s0 = inlined_call_operand.vmem [shape: f32[16,32], index: 0, kind: input, shape index: {}]   ;;  %s200_s2 = inlined_call_operand.vmem [shape: f32[1,32], index: 2, kind: input, shape index: {}]  }
   0x1   :  { %107 = vmatprep.subr.bf16.mxu0 %v117_v0  ;;  %v27_v1 = vld [vmem:[%s197_s1] sm:$0xff]  ;;  %v28_v2 = vld [vmem:[%s197_s1 + $0x8] sm:$0xff]  ;;  %v29_v3 = vld [vmem:[%s197_s1 + $0x10] sm:$0xff]  ;;  %111 = vmatprep.mubr.msk.bf16.mxu0 %vm118_vm1, %v117_v0  ;;  %20 = vst.msk [vmem:[%s198_s3] sm:$0xff] %vm19_vm0, %v117_v0 }
   0x2   :  { %21 = vst.msk [vmem:[%s198_s3 + $0x8] sm:$0xff] %vm19_vm0, %v117_v0  ;;  %v31_v4 = vpack.c.bf16 %v28_v2, %v27_v1  ;;  %v30_v5 = vld [vmem:[%s197_s1 + $0x18] sm:$0xff]  ;;  %v24_v7 = vld [vmem:[%s199_s0] sm:$0xff]  ;;  %v25_v8 = vld [vmem:[%s199_s0 + $0x8] sm:$0xff] }
   0x3   :  { %v32_v6 = vpack.c.bf16 %v30_v5, %v29_v3  ;;  %v26_v9 = vpack.c.bf16 %v25_v8, %v24_v7  ;;  %v103_v18 = vld [vmem:[%s200_s2] ss:$0 sm:$0xff] }
   0x4   :  { %108 = vmatpush3.bf16.msra.mxu0 %v31_v4 }
   0x5   :  { %109 = vmatprep.subr.bf16.mxu0 %v117_v0 }
   0x8   :  { %110 = vmatpush3.bf16.msra.mxu0 %v32_v6  ;;  %v22_v10 = vld [vmem:[%s198_s3] sm:$0xff] }
   0x9   :  { %v23_v12 = vld [vmem:[%s198_s3 + $0x8] sm:$0xff] }
   0xb   :  { %112 = vmatmul.mubr.msk.bf16.vlgmr.msra.gmra.mrb[0].mxu0 %vm19_vm0, %v26_v9 }
  0xde   :  { %v71_v11 = vpop.f32.mrb[0].mxu0 }
  0xdf   :  { %v78_v13 = vadd.f32 %v71_v11, %v22_v10  ;;  %v113_v14 = vpop.f32.mrb[1].mxu0 }
  0xe0   :  { %v74_v15 = vpop.f32.mrb[2].mxu0 }
  0xe1   :  { %80 = vst.msk [vmem:[%s198_s3] sm:$0xff] %vm19_vm0, %v78_v13  ;;  %v79_v16 = vadd.f32 %v74_v15, %v23_v12  ;;  %v114_v17 = vpop.f32.mrb[3].mxu0 }
  0xe3   :  { %81 = vst.msk [vmem:[%s198_s3 + $0x8] sm:$0xff] %vm19_vm0, %v79_v16 }
  0xe8   :  { %v85_v19 = vld [vmem:[%s198_s3] sm:$0xff] }
  0xe9   :  { %v94_v20 = vadd.f32 %v103_v18, %v85_v19 }
  0xea   :  { %v86_v21 = vld [vmem:[%s198_s3 + $0x8] sm:$0xff] }
  0xeb   :  { %96 = vst.msk [vmem:[%s198_s3] sm:$0xff] %vm19_vm0, %v94_v20  ;;  %v95_v22 = vadd.f32 %v103_v18, %v86_v21 }
  0xed   :  { %97 = vst.msk [vmem:[%s198_s3 + $0x8] sm:$0xff] %vm19_vm0, %v95_v22 }

// kernel: transformer_forward.18
= control target key start
LH: loop header
LB: loop body
LE: loop exit
PB: predicated region body
PF: predicated region fallthrough
CT: control target
= control target key end

     0   :  { %vm19_vm0 = vcmask 785408   ;;  %v118_v0 = vmov 0.0   ;;  %vm119_vm1 = vmmov 0   ;;  %vm33_vm2 = vcmask 261120   ;;  %s197_s3 = inlined_call_operand.vmem [shape: f32[16,96], index: 3, kind: output, shape index: {}]   ;;  %s198_s1 = inlined_call_operand.vmem [shape: f32[32,96], index: 1, kind: input, shape index: {}]   ;;  %s199_s0 = inlined_call_operand.vmem [shape: f32[16,32], index: 0, kind: input, shape index: {}]   ;;  %s200_s2 = inlined_call_operand.vmem [shape: f32[1,96], index: 2, kind: input, shape index: {}]  }
   0x1   :  { %20 = vst.msk [vmem:[%s197_s3] sm:$0xff] %vm19_vm0, %v118_v0  ;;  %21 = vst.msk [vmem:[%s197_s3 + $0x8] sm:$0xff] %vm19_vm0, %v118_v0  ;;  %108 = vmatprep.subr.bf16.mxu0 %v118_v0  ;;  %v27_v1 = vld [vmem:[%s198_s1] sm:$0xff]  ;;  %v28_v2 = vld [vmem:[%s198_s1 + $0x8] sm:$0xff]  ;;  %112 = vmatprep.mubr.msk.bf16.mxu0 %vm119_vm1, %v118_v0 }
   0x2   :  { %v29_v3 = vld [vmem:[%s198_s1 + $0x10] sm:$0xff]  ;;  %v31_v4 = vpack.c.bf16 %v28_v2, %v27_v1  ;;  %v30_v5 = vld [vmem:[%s198_s1 + $0x18] sm:$0xff]  ;;  %v24_v7 = vld [vmem:[%s199_s0] sm:$0xff] }
   0x3   :  { %v32_v6 = vpack.c.bf16 %v30_v5, %v29_v3  ;;  %v25_v8 = vld [vmem:[%s199_s0 + $0x8] sm:$0xff]  ;;  %v104_v18 = vld [vmem:[%s200_s2] ss:$0 sm:$0xff] }
   0x4   :  { %109 = vmatpush3.bf16.msra.mxu0 %v31_v4  ;;  %v26_v9 = vpack.c.bf16 %v25_v8, %v24_v7 }
   0x5   :  { %110 = vmatprep.subr.bf16.mxu0 %v118_v0 }
   0x8   :  { %111 = vmatpush3.bf16.msra.mxu0 %v32_v6  ;;  %v22_v10 = vld [vmem:[%s197_s3] sm:$0xff]  ;;  %v23_v12 = vld [vmem:[%s197_s3 + $0x8] sm:$0xff] }
   0xb   :  { %113 = vmatmul.mubr.msk.bf16.vlgmr.msra.gmra.mrb[0].mxu0 %vm33_vm2, %v26_v9 }
  0xde   :  { %v71_v11 = vpop.f32.mrb[0].mxu0 }
  0xdf   :  { %v78_v13 = vadd.f32 %v71_v11, %v22_v10  ;;  %v114_v14 = vpop.f32.mrb[1].mxu0 }
  0xe0   :  { %v74_v15 = vpop.f32.mrb[2].mxu0 }
  0xe1   :  { %81 = vst.msk [vmem:[%s197_s3] sm:$0xff] %vm19_vm0, %v78_v13  ;;  %v79_v16 = vadd.f32 %v74_v15, %v23_v12  ;;  %v115_v17 = vpop.f32.mrb[3].mxu0 }
  0xe3   :  { %82 = vst.msk [vmem:[%s197_s3 + $0x8] sm:$0xff] %vm19_vm0, %v79_v16 }
  0xe8   :  { %v86_v19 = vld [vmem:[%s197_s3] sm:$0xff] }
  0xe9   :  { %v95_v20 = vadd.f32 %v104_v18, %v86_v19 }
  0xea   :  { %v87_v21 = vld [vmem:[%s197_s3 + $0x8] sm:$0xff] }
  0xeb   :  { %97 = vst.msk [vmem:[%s197_s3] sm:$0xff] %vm19_vm0, %v95_v20  ;;  %v96_v22 = vadd.f32 %v104_v18, %v87_v21 }
  0xed   :  { %98 = vst.msk [vmem:[%s197_s3 + $0x8] sm:$0xff] %vm19_vm0, %v96_v22 }

// kernel: transformer_forward.20
= control target key start
LH: loop header
LB: loop body
LE: loop exit
PB: predicated region body
PF: predicated region fallthrough
CT: control target
= control target key end

     0   :  { %vm28_vm0 = vcmask 261120   ;;  %v181_v0 = vmov 0.0   ;;  %vm182_vm1 = vmmov 0   ;;  %s292_s6 = inlined_call_operand.vmem [shape: f32[16,32], index: 6, kind: output, shape index: {}]   ;;  %s293_s1 = inlined_call_operand.vmem [shape: f32[32,32], index: 1, kind: input, shape index: {}]   ;;  %s294_s0 = inlined_call_operand.vmem [shape: f32[16,32], index: 0, kind: input, shape index: {}]   ;;  %s295_s2 = inlined_call_operand.vmem [shape: f32[1,32], index: 2, kind: input, shape index: {}]   ;;  %s296_s3 = inlined_call_operand.vmem [shape: f32[16,32], index: 3, kind: input, shape index: {}]   ;;  %s297_s4 = inlined_call_operand.vmem [shape: f32[1,32], index: 4, kind: input, shape index: {}]   ;;  %s298_s5 = inlined_call_operand.vmem [shape: f32[1,32], index: 5, kind: input, shape index: {}]  }
   0x1   :  { %29 = vst.msk [vmem:[%s292_s6] sm:$0xff] %vm28_vm0, %v181_v0  ;;  %30 = vst.msk [vmem:[%s292_s6 + $0x8] sm:$0xff] %vm28_vm0, %v181_v0  ;;  %167 = vmatprep.subr.bf16.mxu0 %v181_v0  ;;  %v36_v1 = vld [vmem:[%s293_s1] sm:$0xff]  ;;  %v37_v2 = vld [vmem:[%s293_s1 + $0x8] sm:$0xff]  ;;  %171 = vmatprep.mubr.msk.bf16.mxu0 %vm182_vm1, %v181_v0 }
   0x2   :  { %v38_v3 = vld [vmem:[%s293_s1 + $0x10] sm:$0xff]  ;;  %v40_v4 = vpack.c.bf16 %v37_v2, %v36_v1  ;;  %v39_v5 = vld [vmem:[%s293_s1 + $0x18] sm:$0xff]  ;;  %v33_v7 = vld [vmem:[%s294_s0] sm:$0xff] }
   0x3   :  { %v41_v6 = vpack.c.bf16 %v39_v5, %v38_v3  ;;  %v34_v8 = vld [vmem:[%s294_s0 + $0x8] sm:$0xff]  ;;  %v161_v18 = vld [vmem:[%s295_s2] ss:$0 sm:$0xff] }
   0x4   :  { %168 = vmatpush3.bf16.msra.mxu0 %v40_v4  ;;  %v35_v9 = vpack.c.bf16 %v34_v8, %v33_v7  ;;  %v105_v20 = vld [vmem:[%s296_s3] sm:$0xff]  ;;  %v106_v23 = vld [vmem:[%s296_s3 + $0x8] sm:$0xff] }
   0x5   :  { %169 = vmatprep.subr.bf16.mxu0 %v181_v0  ;;  %v162_v46 = vld [vmem:[%s297_s4] ss:$0 sm:$0xff] }
   0x6   :  { %v163_v48 = vld [vmem:[%s298_s5] ss:$0 sm:$0xff] }
   0x8   :  { %170 = vmatpush3.bf16.msra.mxu0 %v41_v6  ;;  %v31_v10 = vld [vmem:[%s292_s6] sm:$0xff]  ;;  %v32_v12 = vld [vmem:[%s292_s6 + $0x8] sm:$0xff] }
   0xb   :  { %172 = vmatmul.mubr.msk.bf16.vlgmr.msra.gmra.mrb[0].mxu0 %vm28_vm0, %v35_v9 }
  0xde   :  { %v80_v11 = vpop.f32.mrb[0].mxu0 }
  0xdf   :  { %v87_v13 = vadd.f32 %v80_v11, %v31_v10  ;;  %v173_v14 = vpop.f32.mrb[1].mxu0 }
  0xe0   :  { %v83_v15 = vpop.f32.mrb[2].mxu0 }
  0xe1   :  { %89 = vst.msk [vmem:[%s292_s6] sm:$0xff] %vm28_vm0, %v87_v13  ;;  %v88_v16 = vadd.f32 %v83_v15, %v32_v12  ;;  %v174_v17 = vpop.f32.mrb[3].mxu0 }
  0xe3   :  { %90 = vst.msk [vmem:[%s292_s6 + $0x8] sm:$0xff] %vm28_vm0, %v88_v16 }
  0xe8   :  { %v94_v19 = vld [vmem:[%s292_s6] sm:$0xff] }
  0xe9   :  { %v103_v21 = vadd.f32 %v161_v18, %v94_v19 }
  0xea   :  { %v95_v22 = vld [vmem:[%s292_s6 + $0x8] sm:$0xff] }
  0xeb   :  { %v107_v24 = vadd.f32 %v105_v20, %v103_v21  ;;  %v104_v25 = vadd.f32 %v161_v18, %v95_v22 }
  0xed   :  { %v109_v26 = vsel %vm28_vm0, %v107_v24, 0.0  ;;  %v108_v27 = vadd.f32 %v106_v23, %v104_v25 }
  0xee   :  { %110 = vadd.xlane.f32.xlu0 %v109_v26 }
  0xef   :  { %v112_v28 = vsel %vm28_vm0, %v108_v27, 0.0 }
  0xf2   :  { %113 = vadd.xlane.f32.xlu0 %v112_v28 }
 0x17b   :  { %v111_v29 = vpop.xlane.xlu0 %110 }
 0x17c   :  { %v116_v30 = vmul.f32 0.03125, %v111_v29 }
 0x17e   :  { %v118_v31 = vsub.f32 %v107_v24, %v116_v30 }
 0x17f   :  { %v114_v32 = vpop.xlane.xlu0 %113 }
 0x180   :  { %v117_v33 = vmul.f32 0.03125, %v114_v32  ;;  %v120_v34 = vmul.f32 %v118_v31, %v118_v31 }
 0x182   :  { %v119_v35 = vsub.f32 %v108_v27, %v117_v33  ;;  %v122_v36 = vsel %vm28_vm0, %v120_v34, 0.0 }
 0x183   :  { %123 = vadd.xlane.f32.xlu1 %v122_v36 }
 0x184   :  { %v121_v37 = vmul.f32 %v119_v35, %v119_v35 }
 0x186   :  { %v125_v38 = vsel %vm28_vm0, %v121_v37, 0.0 }
 0x187   :  { %126 = vadd.xlane.f32.xlu1 %v125_v38 }
 0x210   :  { %v124_v39 = vpop.xlane.xlu1 %123 }
 0x211   :  { %v128_v40 = vmul.f32 0.03125, %v124_v39 }
 0x213   :  { %v130_v41 = vadd.f32 1e-05, %v128_v40 }
 0x214   :  { %v127_v42 = vpop.xlane.xlu1 %126 }
 0x215   :  { %177 = vrsqrt.f32 %v130_v41  ;;  %v129_v43 = vmul.f32 0.03125, %v127_v42 }
 0x217   :  { %v131_v44 = vadd.f32 1e-05, %v129_v43 }
 0x219   :  { %179 = vrsqrt.f32 %v131_v44 }
 0x21f   :  { %v178_v45 = vpop.eup %177 }
 0x220   :  { %v134_v47 = vmul.f32 %v178_v45, %v118_v31 }
 0x222   :  { %v143_v49 = vmul.f32 %v162_v46, %v134_v47 }
 0x223   :  { %v180_v50 = vpop.eup %179 }
 0x224   :  { %v152_v51 = vadd.f32 %v163_v48, %v143_v49  ;;  %v135_v52 = vmul.f32 %v180_v50, %v119_v35 }
 0x226   :  { %154 = vst.msk [vmem:[%s292_s6] sm:$0xff] %vm28_vm0, %v152_v51  ;;  %v144_v53 = vmul.f32 %v162_v46, %v135_v52 }
 0x228   :  { %v153_v54 = vadd.f32 %v163_v48, %v144_v53 }
 0x22a   :  { %155 = vst.msk [vmem:[%s292_s6 + $0x8] sm:$0xff] %vm28_vm0, %v153_v54 }

// kernel: transformer_forward.19
= control target key start
LH: loop header
LB: loop body
LE: loop exit
PB: predicated region body
PF: predicated region fallthrough
CT: control target
= control target key end

     0   :  { %s948_s18 = smov 0   ;;  %s950_s19 = smov 0   ;;  %s1029_s0 = inlined_call_operand.vmem [shape: f32[2,4,8,8], index: 0, kind: input, shape index: {}]   ;;  %s1030_s1 = inlined_call_operand.vmem [shape: f32[2,4,8,8], index: 1, kind: input, shape index: {}]   ;;  %s1031_s2 = inlined_call_operand.vmem [shape: f32[2,4,8,8], index: 2, kind: input, shape index: {}]   ;;  %s1032_s3 = inlined_call_operand.vmem [shape: f32[2,8,1], index: 3, kind: input, shape index: {}]   ;;  %s1033_s4 = inlined_call_operand.vmem [shape: f32[2,1,8], index: 4, kind: input, shape index: {}]   ;;  %s1034_s5 = inlined_call_operand.vmem [shape: f32[2,4,8,8], index: 5, kind: output, shape index: {}]  }
   0x1   :  { %s952_s20 = smov 0   ;;  %s954_s21 = smov 0  }
   0x2   :  { %s956_s22 = smov 0  }
   0x3 LB: > { %s37_s23 = sadd.s32 1, %s904_s20  ;;  %s41_s24 = sadd.s32 1, %s908_s21  ;;  %s912_s22 = sphi %s956_s22, %s15_s22   ;;  %s908_s21 = sphi %s954_s21, %s1038_s21   ;;  %s904_s20 = sphi %s952_s20, %s1037_s20   ;;  %s900_s19 = sphi %s950_s19, %s1036_s19   ;;  %s896_s18 = sphi %s948_s18, %s1035_s18  }
   0x4   : > { %p39_p0 = scmp.ge.s32.totalorder %s37_s23, 4  ;;  %p792_p1 = scmp.ge.s32.totalorder %s912_s22, 1 }
   0x5   : > { %p294_p2 = scmp.lt.s32.totalorder %s912_s22, 9 }
   0x6   : > { %s1040_s23 = smov (%p39_p0, %s37_s23), 0  ;;  %s1042_s24 = smov (!%p39_p0, %s41_s24), %s908_s21 }
   0x7   : > { %p295_p3 = pnand %p792_p1, %p294_p2  ;;  %p43_p4 = scmp.ge.s32.totalorder %s1042_s24, 2 }
   0x8   : > { %p369_p5 = scmp.lt.s32.totalorder (!%p295_p3), %s900_s19, 1  ;;  %p371_p6 = scmp.lt.s32.totalorder (!%p295_p3), %s896_s18, 3  ;;  %vm434_vm0 = vcmask (!%p295_p3), 64512   ;;  %v914_v0 = vmov (!%p295_p3), 0.0   ;;  %vm915_vm1 = vmmov (!%p295_p3), 0   ;;  %v916_v1 = vmov (!%p295_p3), 0  }
   0x9   : > { %s1044_s24 = smov (%p43_p4, %s1042_s24), 0  ;;  %298 = sbr.rel (%p295_p3) target bundleno = 828 (0x33c), region = 40 }
   0xa   : > { %810 = vmatprep.subr.bf16.mxu0 (!%p295_p3), %v914_v0  ;;  %435 = vst.msk [vmem:[#allocation4] sm:$0xff] (!%p295_p3), %vm434_vm0, %v914_v0  ;;  %812 = vmatprep.mubr.msk.bf16.mxu0 (!%p295_p3), %vm915_vm1, %v914_v0  ;;  %vm431_vm4 = vcmask (!%p295_p3), 7168   ;;  %v917_v12 = vmov (!%p295_p3), -inf   ;;  %v498_v13 = vlaneseq (!%p295_p3)  ;;  %vm554_vm10 = vcmask (!%p295_p3), 1043456  }
   0xb   : > { %866 = vset.pattern.permute.xlu0 (!%p295_p3), %v916_v1  ;;  %867 = vset.pattern.permute.xlu1 (!%p295_p3), %v916_v1  ;;  %432 = vst.msk [vmem:[#allocation2] sm:$0xff] (!%p295_p3), %vm431_vm4, %v917_v12  ;;  %433 = vst.msk [vmem:[#allocation3] sm:$0xff] (!%p295_p3), %vm431_vm4, %v914_v0 }
   0xc   : > { %816 = vmatprep.subr.bf16.mxu1 (!%p295_p3), %v914_v0  ;;  %818 = vmatprep.mubr.msk.bf16.mxu1 (!%p295_p3), %vm915_vm1, %v914_v0  ;;  %v499_v14 = vshrl.u32 (!%p295_p3), %v498_v13, 7  ;;  %v511_v18 = vand.u32 (!%p295_p3), 127, %v498_v13 }
   0xe   : > { %v500_v15 = vsub.s32 (!%p295_p3), 0, %v499_v14  ;;  %vm514_vm8 = vcmp.ge.s32.totalorder (!%p295_p3), %v499_v14, %v511_v18 }
  0x10   : > { %s1046_s19 = smov (!%p369_p5, %s900_s19), 1  ;;  %s1048_s18 = smov (!%p371_p6, %s896_s18), 3 }
  0x11   : > { %s793_s25 = sshll.u32 %s1046_s19, 2  ;;  %s799_s26 = sshll.u32 %s1046_s19, 3  ;;  %v541_v45 = vld [vmem:[#allocation4] sm:$0xff] }
  0x12   : > { %s377_s27 = sadd.s32 %s793_s25, %s1048_s18  ;;  %s408_s30 = scalar_lea.vmem %s1032_s3, %s799_s26  ;;  %v517_v25 = vld [vmem:[#allocation2] sm:$0xff]  ;;  %v533_v40 = vld [vmem:[#allocation3] sm:$0xff] }
  0x13   : > { %s982_s6 = sshll.u32 %s377_s27, 3  ;;  %v488_v2 = vld [vmem:[%s408_s30] sm:$0xff]  ;;  %s414_s9 = scalar_lea.vmem %s1033_s4, %s1046_s19 }
  0x14   : > { %s390_s12 = scalar_lea.vmem %s1030_s1, %s982_s6  ;;  %vm489_vm2 = vcmp.gt.f32.partialorder %v488_v2, 0.0  ;;  %v490_v3 = vld [vmem:[%s414_s9] sm:$0x1]  ;;  %s379_s15 = scalar_lea.vmem %s1029_s0, %s982_s6 }
  0x15   : > { %v439_v4 = vld [vmem:[%s390_s12] sm:$0xff]  ;;  %v492_v5 = vsel %vm489_vm2, 1, %v916_v1  ;;  %vm491_vm3 = vcmp.gt.f32.partialorder %v490_v3, 0.0  ;;  %s401_s18 = scalar_lea.vmem %s1031_s2, %s982_s6  ;;  %s425_s26 = scalar_lea.vmem %s1034_s5, %s982_s6 }
  0x16   : > { %v440_v6 = vpack.c.bf16 %v439_v4, %v439_v4  ;;  %v436_v7 = vld [vmem:[%s379_s15] sm:$0xff]  ;;  %494 = vperm.xlu0 %866, %v492_v5   ;;  %v497_v8 = vsel %vm491_vm3, 1, %v916_v1 }
  0x17   : > { %v437_v10 = vmul.f32 0.35355338, %v436_v7  ;;  %v501_v16 = vrot.slane %v497_v8, %v500_v15  ;;  %v549_v30 = vld [vmem:[%s401_s18] sm:$0xff] }
  0x18   : > { %v446_v9 = vsel %vm434_vm0, %v440_v6, 0  ;;  %v550_v31 = vpack.c.bf16 %v549_v30, %v549_v30 }
  0x19   : > { %811 = vmatpush3.bf16.xpose.msra.mxu0 %v446_v9  ;;  %v438_v11 = vpack.c.bf16 %v437_v10, %v437_v10  ;;  %vm502_vm5 = vcmp.eq.s32.totalorder %v501_v16, 1 }
  0x1a   : > { %v556_v32 = vsel %vm554_vm10, %v550_v31, 0 }
  0x1b   : > { %817 = vmatpush3.bf16.msra.mxu1 %v556_v32 }
  0x20   : > { %813 = vmatmul.mubr.msk.bf16.vlgmr.msra.gmra.mrb[0].mxu0 %vm434_vm0, %v438_v11 }
  0x95   : > { %v495_v17 = vpop.permute.xlu0 %494 }
  0x96   : > { %vm496_vm6 = vcmp.eq.s32.totalorder %v495_v17, 1 }
  0x97   : > { %vm503_vm7 = vmand %vm496_vm6, %vm502_vm5 }
  0x98   : > { %vm515_vm9 = vmand %vm503_vm7, %vm514_vm8 }
  0xf3   : > { %v482_v19 = vpop.f32.mrb[0].mxu0 }
  0xf4   : > { %v516_v20 = vsel %vm515_vm9, %v482_v19, -1e+09  ;;  %v814_v21 = vpop.f32.mrb[1].mxu0 }
  0xf5   : > { %v485_v22 = vpop.f32.mrb[2].mxu0  ;;  %v518_v23 = vsel %vm434_vm0, %v516_v20, -inf }
  0xf6   : > { %519 = vmax.xlane.f32.xlu0 %v518_v23  ;;  %v815_v24 = vpop.f32.mrb[3].mxu0 }
 0x183   : > { %v520_v26 = vpop.xlane.xlu0 %519 }
 0x184   : > { %v521_v27 = vmax.f32 %v517_v25, %v520_v26 }
 0x186   : > { %v522_v28 = vsub.f32 %v517_v25, %v521_v27  ;;  %600 = vst.msk [vmem:[#allocation2] sm:$0xff] %vm431_vm4, %v521_v27  ;;  %527 = vperm.xlu1 %867, %v521_v27  }
 0x188   : > { %v523_v29 = vmul.f32 1.442695, %v522_v28 }
 0x18a   : > { %868 = vpow2.f32 %v523_v29 }
 0x194   : > { %v869_v33 = vpop.eup %868 }
 0x195   : > { %544 = vperm.xlu0 %866, %v869_v33   ;;  %v534_v41 = vmul.f32 %v869_v33, %v533_v40 }
 0x205   : > { %v528_v34 = vpop.permute.xlu1 %527 }
 0x206   : > { %v530_v35 = vsub.f32 %v516_v20, %v528_v34 }
 0x208   : > { %v531_v36 = vmul.f32 1.442695, %v530_v35 }
 0x20a   : > { %870 = vpow2.f32 %v531_v36 }
 0x214   : > { %v871_v37 = vpop.eup %870  ;;  %v545_v46 = vpop.permute.xlu0 %544 }
 0x215   : > { %v535_v38 = vsel %vm434_vm0, %v871_v37, 0.0  ;;  %v548_v39 = vpack.c.bf16 %v871_v37, %v871_v37  ;;  %v547_v47 = vmul.f32 %v545_v46, %v541_v45 }
 0x216   : > { %536 = vadd.xlane.f32.xlu1 %v535_v38 }
 0x217   : > { %819 = vmatmul.mubr.msk.bf16.vlgmr.msra.gmra.mrb[0].mxu1 %vm434_vm0, %v548_v39 }
 0x2a3   : > { %v537_v42 = vpop.xlane.xlu1 %536 }
 0x2a4   : > { %v538_v43 = vadd.f32 %v537_v42, %v534_v41 }
 0x2a6   : > { %540 = vst.msk [vmem:[#allocation3] sm:$0xff] %vm431_vm4, %v538_v43 }
 0x2ad   : > { %v605_v44 = vld [vmem:[#allocation3] sm:$0xff] }
 0x2ae   : > { %608 = vperm.xlu1 %867, %v605_v44  }
 0x2ea   : > { %v592_v48 = vpop.f32.mrb[0].mxu1 }
 0x2eb   : > { %v598_v49 = vadd.f32 %v592_v48, %v547_v47  ;;  %v820_v50 = vpop.f32.mrb[1].mxu1 }
 0x2ec   : > { %v595_v51 = vpop.f32.mrb[2].mxu1 }
 0x2ed   : > { %599 = vst.msk [vmem:[#allocation4] sm:$0xff] %vm434_vm0, %v598_v49  ;;  %v821_v52 = vpop.f32.mrb[3].mxu1 }
 0x2f4   : > { %v604_v55 = vld [vmem:[#allocation4] sm:$0xff] }
 0x32d   : > { %v609_v53 = vpop.permute.xlu1 %608 }
 0x32e   : > { %872 = vrcp.f32 %v609_v53 }
 0x338   : > { %v873_v54 = vpop.eup %872 }
 0x339   : > { %v612_v56 = vmul.f32 %v873_v54, %v604_v55 }
 0x33b   : > { %613 = vst.msk [vmem:[%s425_s26] sm:$0xff] %vm434_vm0, %v612_v56 }
 0x33c PF: > { %s15_s22 = sadd.s32 1, %s912_s22   ;;  %s1035_s18 = smov %s904_s20 }
 0x33d   : > { %p12_p7 = scmp.ge.s32.totalorder %s15_s22, 10   ;;  %s1036_s19 = smov %s908_s21 }
 0x33e   : > { %s1037_s20 = smov %s1040_s23  ;;  %s1038_s21 = smov %s1044_s24 }
 0x33f   :  { %14 = sbr.rel (!%p12_p7) target bundleno = 3 (0x3), region = 90 }

// kernel: transformer_forward.22
= control target key start
LH: loop header
LB: loop body
LE: loop exit
PB: predicated region body
PF: predicated region fallthrough
CT: control target
= control target key end

     0   :  { %vm19_vm0 = vcmask 523264   ;;  %v118_v0 = vmov 0.0   ;;  %vm119_vm1 = vmmov 0   ;;  %vm33_vm2 = vcmask 261120   ;;  %s197_s3 = inlined_call_operand.vmem [shape: f32[16,64], index: 3, kind: output, shape index: {}]   ;;  %s198_s1 = inlined_call_operand.vmem [shape: f32[32,64], index: 1, kind: input, shape index: {}]   ;;  %s199_s0 = inlined_call_operand.vmem [shape: f32[16,32], index: 0, kind: input, shape index: {}]   ;;  %s200_s2 = inlined_call_operand.vmem [shape: f32[1,64], index: 2, kind: input, shape index: {}]  }
   0x1   :  { %20 = vst.msk [vmem:[%s197_s3] sm:$0xff] %vm19_vm0, %v118_v0  ;;  %21 = vst.msk [vmem:[%s197_s3 + $0x8] sm:$0xff] %vm19_vm0, %v118_v0  ;;  %108 = vmatprep.subr.bf16.mxu0 %v118_v0  ;;  %v27_v1 = vld [vmem:[%s198_s1] sm:$0xff]  ;;  %v28_v2 = vld [vmem:[%s198_s1 + $0x8] sm:$0xff]  ;;  %112 = vmatprep.mubr.msk.bf16.mxu0 %vm119_vm1, %v118_v0 }
   0x2   :  { %v29_v3 = vld [vmem:[%s198_s1 + $0x10] sm:$0xff]  ;;  %v31_v4 = vpack.c.bf16 %v28_v2, %v27_v1  ;;  %v30_v5 = vld [vmem:[%s198_s1 + $0x18] sm:$0xff]  ;;  %v24_v7 = vld [vmem:[%s199_s0] sm:$0xff] }
   0x3   :  { %v32_v6 = vpack.c.bf16 %v30_v5, %v29_v3  ;;  %v25_v8 = vld [vmem:[%s199_s0 + $0x8] sm:$0xff]  ;;  %v104_v18 = vld [vmem:[%s200_s2] ss:$0 sm:$0xff] }
   0x4   :  { %109 = vmatpush3.bf16.msra.mxu0 %v31_v4  ;;  %v26_v9 = vpack.c.bf16 %v25_v8, %v24_v7 }
   0x5   :  { %110 = vmatprep.subr.bf16.mxu0 %v118_v0 }
   0x8   :  { %111 = vmatpush3.bf16.msra.mxu0 %v32_v6  ;;  %v22_v10 = vld [vmem:[%s197_s3] sm:$0xff]  ;;  %v23_v12 = vld [vmem:[%s197_s3 + $0x8] sm:$0xff] }
   0xb   :  { %113 = vmatmul.mubr.msk.bf16.vlgmr.msra.gmra.mrb[0].mxu0 %vm33_vm2, %v26_v9 }
  0xde   :  { %v71_v11 = vpop.f32.mrb[0].mxu0 }
  0xdf   :  { %v78_v13 = vadd.f32 %v71_v11, %v22_v10  ;;  %v114_v14 = vpop.f32.mrb[1].mxu0 }
  0xe0   :  { %v74_v15 = vpop.f32.mrb[2].mxu0 }
  0xe1   :  { %81 = vst.msk [vmem:[%s197_s3] sm:$0xff] %vm19_vm0, %v78_v13  ;;  %v79_v16 = vadd.f32 %v74_v15, %v23_v12  ;;  %v115_v17 = vpop.f32.mrb[3].mxu0 }
  0xe3   :  { %82 = vst.msk [vmem:[%s197_s3 + $0x8] sm:$0xff] %vm19_vm0, %v79_v16 }
  0xe8   :  { %v86_v19 = vld [vmem:[%s197_s3] sm:$0xff] }
  0xe9   :  { %v95_v20 = vadd.f32 %v104_v18, %v86_v19 }
  0xea   :  { %v87_v21 = vld [vmem:[%s197_s3 + $0x8] sm:$0xff] }
  0xeb   :  { %97 = vst.msk [vmem:[%s197_s3] sm:$0xff] %vm19_vm0, %v95_v20  ;;  %v96_v22 = vadd.f32 %v104_v18, %v87_v21 }
  0xed   :  { %98 = vst.msk [vmem:[%s197_s3 + $0x8] sm:$0xff] %vm19_vm0, %v96_v22 }

// kernel: transformer_forward.17
= control target key start
LH: loop header
LB: loop body
LE: loop exit
PB: predicated region body
PF: predicated region fallthrough
CT: control target
= control target key end

     0   :  { %v268_v0 = vmov 0.0   ;;  %vm269_vm0 = vmmov 0   ;;  %vm31_vm1 = vcmask 261120   ;;  %vm112_vm2 = vcmask 523264   ;;  %s405_s1 = inlined_call_operand.vmem [shape: f32[32,64], index: 1, kind: input, shape index: {}]   ;;  %s406_s3 = inlined_call_operand.vmem [shape: f32[64,32], index: 3, kind: input, shape index: {}]   ;;  %s407_s0 = inlined_call_operand.vmem [shape: f32[16,32], index: 0, kind: input, shape index: {}]   ;;  %s408_s7 = inlined_call_operand.vmem [shape: f32[16,32], index: 7, kind: output, shape index: {}]   ;;  %s409_s2 = inlined_call_operand.vmem [shape: f32[1,64], index: 2, kind: input, shape index: {}]   ;;  %s410_s4 = inlined_call_operand.vmem [shape: f32[1,32], index: 4, kind: input, shape index: {}]   ;;  %s411_s5 = inlined_call_operand.vmem [shape: f32[1,32], index: 5, kind: input, shape index: {}]   ;;  %s412_s6 = inlined_call_operand.vmem [shape: f32[1,32], index: 6, kind: input, shape index: {}]  }
   0x1   :  { %242 = vmatprep.subr.bf16.mxu0 %v268_v0  ;;  %v37_v1 = vld [vmem:[%s405_s1] sm:$0xff]  ;;  %v38_v2 = vld [vmem:[%s405_s1 + $0x8] sm:$0xff]  ;;  %v39_v3 = vld [vmem:[%s405_s1 + $0x10] sm:$0xff]  ;;  %246 = vmatprep.mubr.msk.bf16.mxu0 %vm269_vm0, %v268_v0  ;;  %32 = vst.msk [vmem:[%s408_s7] sm:$0xff] %vm31_vm1, %v268_v0 }
   0x2   :  { %v41_v4 = vpack.c.bf16 %v38_v2, %v37_v1  ;;  %v40_v5 = vld [vmem:[%s405_s1 + $0x18] sm:$0xff]  ;;  %250 = vmatprep.subr.bf16.mxu1 %v268_v0  ;;  %258 = vmatprep.mubr.msk.bf16.mxu1 %vm269_vm0, %v268_v0  ;;  %v100_v6 = vld [vmem:[%s406_s3] sm:$0xff]  ;;  %v101_v7 = vld [vmem:[%s406_s3 + $0x8] sm:$0xff]  ;;  %33 = vst.msk [vmem:[%s408_s7 + $0x8] sm:$0xff] %vm31_vm1, %v268_v0 }
   0x3   :  { %v102_v8 = vld [vmem:[%s406_s3 + $0x10] sm:$0xff]  ;;  %v42_v9 = vpack.c.bf16 %v40_v5, %v39_v3  ;;  %v34_v10 = vld [vmem:[%s407_s0] sm:$0xff]  ;;  %v35_v11 = vld [vmem:[%s407_s0 + $0x8] sm:$0xff]  ;;  %v108_v12 = vpack.c.bf16 %v101_v7, %v100_v6 }
   0x4   :  { %243 = vmatpush3.bf16.msra.mxu0 %v41_v4  ;;  %v103_v13 = vld [vmem:[%s406_s3 + $0x18] sm:$0xff]  ;;  %v36_v15 = vpack.c.bf16 %v35_v11, %v34_v10  ;;  %v104_v16 = vld [vmem:[%s406_s3 + $0x20] sm:$0xff]  ;;  %v105_v17 = vld [vmem:[%s406_s3 + $0x28] sm:$0xff] }
   0x5   :  { %244 = vmatprep.subr.bf16.mxu0 %v268_v0  ;;  %251 = vmatpush3.bf16.msra.mxu1 %v108_v12  ;;  %v109_v14 = vpack.c.bf16 %v103_v13, %v102_v8  ;;  %v110_v18 = vpack.c.bf16 %v105_v17, %v104_v16  ;;  %v106_v19 = vld [vmem:[%s406_s3 + $0x30] sm:$0xff]  ;;  %v107_v20 = vld [vmem:[%s406_s3 + $0x38] sm:$0xff]  ;;  %v228_v22 = vld [vmem:[%s409_s2] ss:$0 sm:$0xff] }
   0x6   :  { %252 = vmatprep.subr.bf16.mxu1 %v268_v0  ;;  %v111_v21 = vpack.c.bf16 %v107_v20, %v106_v19  ;;  %v231_v40 = vld [vmem:[%s410_s4] ss:$0 sm:$0xff] }
   0x7   :  { %v232_v2 = vld [vmem:[%s411_s5] ss:$0 sm:$0xff] }
   0x8   :  { %245 = vmatpush3.bf16.msra.mxu0 %v42_v9  ;;  %v97_v32 = vld [vmem:[%s408_s7] sm:$0xff] }
   0x9   :  { %253 = vmatpush3.bf16.msra.mxu1 %v109_v14  ;;  %v98_v34 = vld [vmem:[%s408_s7 + $0x8] sm:$0xff]  ;;  %v233_v4 = vld [vmem:[%s412_s6] ss:$0 sm:$0xff] }
   0xa   :  { %254 = vmatprep.subr.bf16.mxu1 %v268_v0 }
   0xb   :  { %247 = vmatmul.mubr.msk.bf16.vlgmr.msra.gmra.mrb[0].mxu0 %vm31_vm1, %v36_v15 }
   0xd   :  { %255 = vmatpush3.bf16.msra.mxu1 %v110_v18 }
   0xe   :  { %256 = vmatprep.subr.bf16.mxu1 %v268_v0 }
  0x11   :  { %257 = vmatpush3.bf16.msra.mxu1 %v111_v21 }
  0xde   :  { %v88_v23 = vpop.f32.mrb[0].mxu0 }
  0xdf   :  { %v89_v24 = vadd.f32 %v228_v22, %v88_v23  ;;  %v248_v25 = vpop.f32.mrb[1].mxu0 }
  0xe0   :  { %v91_v26 = vpop.f32.mrb[2].mxu0 }
  0xe1   :  { %v92_v27 = vadd.f32 %v228_v22, %v91_v26  ;;  %v249_v28 = vpop.f32.mrb[3].mxu0  ;;  %v95_v29 = vmax.f32 %v89_v24, 0.0 }
  0xe3   :  { %v96_v30 = vmax.f32 %v92_v27, 0.0 }
  0xe5   :  { %v99_v31 = vpack.c.bf16 %v96_v30, %v95_v29 }
  0xe7   :  { %259 = vmatmul.mubr.msk.bf16.vlgmr.msra.gmra.mrb[0].mxu1 %vm112_vm2, %v99_v31 }
 0x1ba   :  { %v150_v33 = vpop.f32.mrb[0].mxu1 }
 0x1bb   :  { %v157_v35 = vadd.f32 %v150_v33, %v97_v32  ;;  %v260_v36 = vpop.f32.mrb[1].mxu1 }
 0x1bc   :  { %v153_v37 = vpop.f32.mrb[2].mxu1 }
 0x1bd   :  { %159 = vst.msk [vmem:[%s408_s7] sm:$0xff] %vm31_vm1, %v157_v35  ;;  %v158_v38 = vadd.f32 %v153_v37, %v98_v34  ;;  %v261_v39 = vpop.f32.mrb[3].mxu1 }
 0x1bf   :  { %160 = vst.msk [vmem:[%s408_s7 + $0x8] sm:$0xff] %vm31_vm1, %v158_v38 }
 0x1c4   :  { %v164_v41 = vld [vmem:[%s408_s7] sm:$0xff] }
 0x1c5   :  { %v173_v42 = vadd.f32 %v231_v40, %v164_v41 }
 0x1c6   :  { %v165_v43 = vld [vmem:[%s408_s7 + $0x8] sm:$0xff] }
 0x1c7   :  { %v175_v44 = vadd.f32 %v173_v42, %v34_v10  ;;  %v174_v45 = vadd.f32 %v231_v40, %v165_v43 }
 0x1c9   :  { %v177_v46 = vsel %vm31_vm1, %v175_v44, 0.0  ;;  %v176_v47 = vadd.f32 %v174_v45, %v35_v11 }
 0x1ca   :  { %178 = vadd.xlane.f32.xlu0 %v177_v46 }
 0x1cb   :  { %v180_v48 = vsel %vm31_vm1, %v176_v47, 0.0 }
 0x1ce   :  { %181 = vadd.xlane.f32.xlu0 %v180_v48 }
 0x257   :  { %v179_v49 = vpop.xlane.xlu0 %178 }
 0x258   :  { %v184_v50 = vmul.f32 0.03125, %v179_v49 }
 0x25a   :  { %v186_v51 = vsub.f32 %v175_v44, %v184_v50 }
 0x25b   :  { %v182_v52 = vpop.xlane.xlu0 %181 }
 0x25c   :  { %v185_v53 = vmul.f32 0.03125, %v182_v52  ;;  %v188_v54 = vmul.f32 %v186_v51, %v186_v51 }
 0x25e   :  { %v187_v55 = vsub.f32 %v176_v47, %v185_v53  ;;  %v190_v56 = vsel %vm31_vm1, %v188_v54, 0.0 }
 0x25f   :  { %191 = vadd.xlane.f32.xlu1 %v190_v56 }
 0x260   :  { %v189_v57 = vmul.f32 %v187_v55, %v187_v55 }
 0x262   :  { %v193_v58 = vsel %vm31_vm1, %v189_v57, 0.0 }
 0x263   :  { %194 = vadd.xlane.f32.xlu1 %v193_v58 }
 0x2ec   :  { %v192_v59 = vpop.xlane.xlu1 %191 }
 0x2ed   :  { %v196_v60 = vmul.f32 0.03125, %v192_v59 }
 0x2ef   :  { %v198_v61 = vadd.f32 1e-05, %v196_v60 }
 0x2f0   :  { %v195_v62 = vpop.xlane.xlu1 %194 }
 0x2f1   :  { %264 = vrsqrt.f32 %v198_v61  ;;  %v197_v63 = vmul.f32 0.03125, %v195_v62 }
 0x2f3   :  { %v199_v0 = vadd.f32 1e-05, %v197_v63 }
 0x2f5   :  { %266 = vrsqrt.f32 %v199_v0 }
 0x2fb   :  { %v265_v1 = vpop.eup %264 }
 0x2fc   :  { %v202_v3 = vmul.f32 %v265_v1, %v186_v51 }
 0x2fe   :  { %v211_v5 = vmul.f32 %v232_v2, %v202_v3 }
 0x2ff   :  { %v267_v6 = vpop.eup %266 }
 0x300   :  { %v220_v7 = vadd.f32 %v233_v4, %v211_v5  ;;  %v203_v8 = vmul.f32 %v267_v6, %v187_v55 }
 0x302   :  { %222 = vst.msk [vmem:[%s408_s7] sm:$0xff] %vm31_vm1, %v220_v7  ;;  %v212_v9 = vmul.f32 %v232_v2, %v203_v8 }
 0x304   :  { %v221_v10 = vadd.f32 %v233_v4, %v212_v9 }
 0x306   :  { %223 = vst.msk [vmem:[%s408_s7 + $0x8] sm:$0xff] %vm31_vm1, %v221_v10 }

// kernel: transformer_forward.15
= control target key start
LH: loop header
LB: loop body
LE: loop exit
PB: predicated region body
PF: predicated region fallthrough
CT: control target
= control target key end

     0   :  { %s936_s18 = smov 0   ;;  %s938_s19 = smov 0   ;;  %s1022_s0 = inlined_call_operand.vmem [shape: f32[2,4,8,8], index: 0, kind: input, shape index: {}]   ;;  %s1023_s1 = inlined_call_operand.vmem [shape: f32[2,4,8,8], index: 1, kind: input, shape index: {}]   ;;  %s1024_s2 = inlined_call_operand.vmem [shape: f32[2,4,8,8], index: 2, kind: input, shape index: {}]   ;;  %s1025_s3 = inlined_call_operand.vmem [shape: f32[2,8,1], index: 3, kind: input, shape index: {}]   ;;  %s1026_s4 = inlined_call_operand.vmem [shape: f32[2,1,8], index: 4, kind: input, shape index: {}]   ;;  %s1027_s5 = inlined_call_operand.vmem [shape: f32[2,4,8,8], index: 5, kind: output, shape index: {}]  }
   0x1   :  { %s940_s20 = smov 0   ;;  %s942_s21 = smov 0  }
   0x2   :  { %s944_s22 = smov 0  }
   0x3 LB: > { %s37_s23 = sadd.s32 1, %s892_s20  ;;  %s41_s24 = sadd.s32 1, %s896_s21  ;;  %s900_s22 = sphi %s944_s22, %s15_s22   ;;  %s896_s21 = sphi %s942_s21, %s1031_s21   ;;  %s892_s20 = sphi %s940_s20, %s1030_s20   ;;  %s888_s19 = sphi %s938_s19, %s1029_s19   ;;  %s884_s18 = sphi %s936_s18, %s1028_s18  }
   0x4   : > { %p39_p0 = scmp.ge.s32.totalorder %s37_s23, 4  ;;  %p780_p1 = scmp.ge.s32.totalorder %s900_s22, 1 }
   0x5   : > { %p294_p2 = scmp.lt.s32.totalorder %s900_s22, 9 }
   0x6   : > { %s1033_s23 = smov (%p39_p0, %s37_s23), 0  ;;  %s1035_s24 = smov (!%p39_p0, %s41_s24), %s896_s21 }
   0x7   : > { %p295_p3 = pnand %p780_p1, %p294_p2  ;;  %p43_p4 = scmp.ge.s32.totalorder %s1035_s24, 2 }
   0x8   : > { %p369_p5 = scmp.lt.s32.totalorder (!%p295_p3), %s888_s19, 1  ;;  %p371_p6 = scmp.lt.s32.totalorder (!%p295_p3), %s884_s18, 3  ;;  %vm434_vm0 = vcmask (!%p295_p3), 64512   ;;  %v902_v0 = vmov (!%p295_p3), 0.0   ;;  %vm903_vm1 = vmmov (!%p295_p3), 0   ;;  %v904_v1 = vmov (!%p295_p3), 0  }
   0x9   : > { %s1037_s24 = smov (%p43_p4, %s1035_s24), 0  ;;  %298 = sbr.rel (%p295_p3) target bundleno = 828 (0x33c), region = 40 }
   0xa   : > { %798 = vmatprep.subr.bf16.mxu0 (!%p295_p3), %v902_v0  ;;  %435 = vst.msk [vmem:[#allocation4] sm:$0xff] (!%p295_p3), %vm434_vm0, %v902_v0  ;;  %800 = vmatprep.mubr.msk.bf16.mxu0 (!%p295_p3), %vm903_vm1, %v902_v0  ;;  %vm431_vm3 = vcmask (!%p295_p3), 7168   ;;  %v905_v10 = vmov (!%p295_p3), -inf   ;;  %v498_v11 = vlaneseq (!%p295_p3)  ;;  %vm542_vm8 = vcmask (!%p295_p3), 1043456  }
   0xb   : > { %854 = vset.pattern.permute.xlu0 (!%p295_p3), %v904_v1  ;;  %855 = vset.pattern.permute.xlu1 (!%p295_p3), %v904_v1  ;;  %432 = vst.msk [vmem:[#allocation2] sm:$0xff] (!%p295_p3), %vm431_vm3, %v905_v10  ;;  %433 = vst.msk [vmem:[#allocation3] sm:$0xff] (!%p295_p3), %vm431_vm3, %v902_v0 }
   0xc   : > { %804 = vmatprep.subr.bf16.mxu1 (!%p295_p3), %v902_v0  ;;  %806 = vmatprep.mubr.msk.bf16.mxu1 (!%p295_p3), %vm903_vm1, %v902_v0  ;;  %v499_v13 = vshrl.u32 (!%p295_p3), %v498_v11, 7 }
   0xe   : > { %v500_v14 = vsub.s32 (!%p295_p3), 0, %v499_v13 }
  0x10   : > { %s1039_s19 = smov (!%p369_p5, %s888_s19), 1  ;;  %s1041_s18 = smov (!%p371_p6, %s884_s18), 3 }
  0x11   : > { %s781_s25 = sshll.u32 %s1039_s19, 2  ;;  %s787_s26 = sshll.u32 %s1039_s19, 3  ;;  %v529_v44 = vld [vmem:[#allocation4] sm:$0xff] }
  0x12   : > { %s377_s27 = sadd.s32 %s781_s25, %s1041_s18  ;;  %s408_s30 = scalar_lea.vmem %s1025_s3, %s787_s26  ;;  %v505_v24 = vld [vmem:[#allocation2] sm:$0xff]  ;;  %v521_v39 = vld [vmem:[#allocation3] sm:$0xff] }
  0x13   : > { %s974_s6 = sshll.u32 %s377_s27, 3  ;;  %v488_v2 = vld [vmem:[%s408_s30] sm:$0xff]  ;;  %s414_s15 = scalar_lea.vmem %s1026_s4, %s1039_s19 }
  0x14   : > { %s390_s9 = scalar_lea.vmem %s1023_s1, %s974_s6  ;;  %vm489_vm2 = vcmp.gt.f32.partialorder %v488_v2, 0.0  ;;  %s379_s12 = scalar_lea.vmem %s1022_s0, %s974_s6  ;;  %v490_v12 = vld [vmem:[%s414_s15] sm:$0x1] }
  0x15   : > { %v439_v3 = vld [vmem:[%s390_s9] sm:$0xff]  ;;  %v492_v4 = vsel %vm489_vm2, 1, %v904_v1  ;;  %vm491_vm4 = vcmp.gt.f32.partialorder %v490_v12, 0.0  ;;  %s401_s18 = scalar_lea.vmem %s1024_s2, %s974_s6  ;;  %s425_s26 = scalar_lea.vmem %s1027_s5, %s974_s6 }
  0x16   : > { %v440_v5 = vpack.c.bf16 %v439_v3, %v439_v3  ;;  %v436_v6 = vld [vmem:[%s379_s12] sm:$0xff]  ;;  %494 = vperm.xlu0 %854, %v492_v4   ;;  %v497_v15 = vsel %vm491_vm4, 1, %v904_v1 }
  0x17   : > { %v437_v8 = vmul.f32 0.35355338, %v436_v6  ;;  %v501_v16 = vrot.slane %v497_v15, %v500_v14  ;;  %v537_v29 = vld [vmem:[%s401_s18] sm:$0xff] }
  0x18   : > { %v446_v7 = vsel %vm434_vm0, %v440_v5, 0  ;;  %v538_v30 = vpack.c.bf16 %v537_v29, %v537_v29 }
  0x19   : > { %799 = vmatpush3.bf16.xpose.msra.mxu0 %v446_v7  ;;  %v438_v9 = vpack.c.bf16 %v437_v8, %v437_v8  ;;  %vm502_vm6 = vcmp.eq.s32.totalorder %v501_v16, 1 }
  0x1a   : > { %v544_v31 = vsel %vm542_vm8, %v538_v30, 0 }
  0x1b   : > { %805 = vmatpush3.bf16.msra.mxu1 %v544_v31 }
  0x20   : > { %801 = vmatmul.mubr.msk.bf16.vlgmr.msra.gmra.mrb[0].mxu0 %vm434_vm0, %v438_v9 }
  0x95   : > { %v495_v17 = vpop.permute.xlu0 %494 }
  0x96   : > { %vm496_vm5 = vcmp.eq.s32.totalorder %v495_v17, 1 }
  0x97   : > { %vm503_vm7 = vmand %vm496_vm5, %vm502_vm6 }
  0xf3   : > { %v482_v18 = vpop.f32.mrb[0].mxu0 }
  0xf4   : > { %v504_v19 = vsel %vm503_vm7, %v482_v18, -1e+09  ;;  %v802_v20 = vpop.f32.mrb[1].mxu0 }
  0xf5   : > { %v485_v21 = vpop.f32.mrb[2].mxu0  ;;  %v506_v22 = vsel %vm434_vm0, %v504_v19, -inf }
  0xf6   : > { %507 = vmax.xlane.f32.xlu0 %v506_v22  ;;  %v803_v23 = vpop.f32.mrb[3].mxu0 }
 0x183   : > { %v508_v25 = vpop.xlane.xlu0 %507 }
 0x184   : > { %v509_v26 = vmax.f32 %v505_v24, %v508_v25 }
 0x186   : > { %v510_v27 = vsub.f32 %v505_v24, %v509_v26  ;;  %588 = vst.msk [vmem:[#allocation2] sm:$0xff] %vm431_vm3, %v509_v26  ;;  %515 = vperm.xlu1 %855, %v509_v26  }
 0x188   : > { %v511_v28 = vmul.f32 1.442695, %v510_v27 }
 0x18a   : > { %856 = vpow2.f32 %v511_v28 }
 0x194   : > { %v857_v32 = vpop.eup %856 }
 0x195   : > { %532 = vperm.xlu0 %854, %v857_v32   ;;  %v522_v40 = vmul.f32 %v857_v32, %v521_v39 }
 0x205   : > { %v516_v33 = vpop.permute.xlu1 %515 }
 0x206   : > { %v518_v34 = vsub.f32 %v504_v19, %v516_v33 }
 0x208   : > { %v519_v35 = vmul.f32 1.442695, %v518_v34 }
 0x20a   : > { %858 = vpow2.f32 %v519_v35 }
 0x214   : > { %v859_v36 = vpop.eup %858  ;;  %v533_v45 = vpop.permute.xlu0 %532 }
 0x215   : > { %v523_v37 = vsel %vm434_vm0, %v859_v36, 0.0  ;;  %v536_v38 = vpack.c.bf16 %v859_v36, %v859_v36  ;;  %v535_v46 = vmul.f32 %v533_v45, %v529_v44 }
 0x216   : > { %524 = vadd.xlane.f32.xlu1 %v523_v37 }
 0x217   : > { %807 = vmatmul.mubr.msk.bf16.vlgmr.msra.gmra.mrb[0].mxu1 %vm434_vm0, %v536_v38 }
 0x2a3   : > { %v525_v41 = vpop.xlane.xlu1 %524 }
 0x2a4   : > { %v526_v42 = vadd.f32 %v525_v41, %v522_v40 }
 0x2a6   : > { %528 = vst.msk [vmem:[#allocation3] sm:$0xff] %vm431_vm3, %v526_v42 }
 0x2ad   : > { %v593_v43 = vld [vmem:[#allocation3] sm:$0xff] }
 0x2ae   : > { %596 = vperm.xlu1 %855, %v593_v43  }
 0x2ea   : > { %v580_v47 = vpop.f32.mrb[0].mxu1 }
 0x2eb   : > { %v586_v48 = vadd.f32 %v580_v47, %v535_v46  ;;  %v808_v49 = vpop.f32.mrb[1].mxu1 }
 0x2ec   : > { %v583_v50 = vpop.f32.mrb[2].mxu1 }
 0x2ed   : > { %587 = vst.msk [vmem:[#allocation4] sm:$0xff] %vm434_vm0, %v586_v48  ;;  %v809_v51 = vpop.f32.mrb[3].mxu1 }
 0x2f4   : > { %v592_v54 = vld [vmem:[#allocation4] sm:$0xff] }
 0x32d   : > { %v597_v52 = vpop.permute.xlu1 %596 }
 0x32e   : > { %860 = vrcp.f32 %v597_v52 }
 0x338   : > { %v861_v53 = vpop.eup %860 }
 0x339   : > { %v600_v55 = vmul.f32 %v861_v53, %v592_v54 }
 0x33b   : > { %601 = vst.msk [vmem:[%s425_s26] sm:$0xff] %vm434_vm0, %v600_v55 }
 0x33c PF: > { %s15_s22 = sadd.s32 1, %s900_s22   ;;  %s1028_s18 = smov %s892_s20 }
 0x33d   : > { %p12_p7 = scmp.ge.s32.totalorder %s15_s22, 10   ;;  %s1029_s19 = smov %s896_s21 }
 0x33e   : > { %s1030_s20 = smov %s1033_s23  ;;  %s1031_s21 = smov %s1037_s24 }
 0x33f   :  { %14 = sbr.rel (!%p12_p7) target bundleno = 3 (0x3), region = 90 }

// kernel: transformer_forward.27
= control target key start
LH: loop header
LB: loop body
LE: loop exit
PB: predicated region body
PF: predicated region fallthrough
CT: control target
= control target key end

     0   :  { %s119_s0 = inlined_call_operand.vmem [shape: f32[16,64], index: 0, kind: input, shape index: {}]   ;;  %s120_s1 = inlined_call_operand.vmem [shape: f32[16,1], index: 1, kind: input, shape index: {}]   ;;  %s121_s2 = inlined_call_operand.hbm [shape: f32[16,64], index: 2, kind: output, shape index: {}]  }
   0x1   :  { %v14_v0 = vld [vmem:[%s120_s1] sm:$0xff] }
   0x2   :  { %7 = vsyncpa [#allocation3], 0  ;;  %v76_v1 = vmov 0   ;;  %v15_v2 = vld [vmem:[%s120_s1 + $0x8] sm:$0xff]  ;;  %v12_v3 = vld [vmem:[%s119_s0] sm:$0xff]  ;;  %vm28_vm0 = vcmask 523264  }
   0x3   :  { %51 = vset.pattern.permute.xlu0 %v76_v1  ;;  %s77_s15 = smov [#allocation2]   ;;  %v13_v6 = vld [vmem:[%s119_s0 + $0x8] sm:$0xff] }
   0x4   :  { %18 = vperm.xlu0 %51, %v14_v0   ;;  %s36_s16 = sshll.u32 %s77_s15, 4  ;;  %s37_s16 = int_to_ptr.vmem [resolvable:$true] %s36_s16 }
   0x5   :  { %s52_s1 = scalar_lea.vmem %s37_s16, 256  ;;  %p57_p1 = scmp.lt.s32.totalorder %s37_s16, %s37_s16 }
   0x6   :  { %p53_p0 = scmp.ne.s32.totalorder %s37_s16, %s52_s1  ;;  %p58_p2 = scmp.lt.s32.totalorder %s52_s1, %s52_s1 }
   0x8   :  { %23 = vperm.xlu0 %51, %v15_v2   ;;  %p59_p3 = por %p58_p2, %p57_p1 }
   0xa   :  { %p60_p4 = pnand %p59_p3, %p53_p0 }
  0x83   :  { %v19_v4 = vpop.permute.xlu0 %18 }
  0x84   :  { %v26_v5 = vsub.f32 %v12_v3, %v19_v4 }
  0x86   :  { %29 = vst.msk [vmem:[#allocation2] sm:$0xff] %vm28_vm0, %v26_v5 }
  0x87   :  { %v24_v7 = vpop.permute.xlu0 %23 }
  0x88   :  { %v27_v8 = vsub.f32 %v13_v6, %v24_v7 }
  0x8a   :  { %30 = vst.msk [vmem:[#allocation2 + $0x8] sm:$0xff] %vm28_vm0, %v27_v8 }
  0x8b   :  { %63 = shalt.err (!%p60_p4)
}
  0x8c   :  { %s64_s21 = scalar_lea.hbm %s121_s2, 256 }
  0x8d   :  { %p65_p5 = scmp.ne.s32.totalorder %s121_s2, %s64_s21  ;;  %p68_p6 = scmp.lt.u32.totalorder %s64_s21, %s121_s2 }
  0x8f   :  { %p70_p7 = pnand %p68_p6, %p65_p5 }
  0x91   :  { %73 = shalt.err (!%p70_p7)
}
  0x92   :  { %s78_s25 = smov 128   ;;  %s79_s26 = smov 8  }
  0x93   :  { %42 = dma.vmem_to_hbm [thread:$0]  %s37_s16, 256, %s121_s2, [#allocation3], %s78_s25, %s78_s25, %s79_s26  }
  0x94   :  { %74 = dma.done.wait [#allocation3], 256  }
  0x95   :  { %75 = vsyncadd [#allocation3], 4294967040 }
  0x96   :  { %46 = vsyncpa [#allocation3], 1 }

// kernel: transformer_forward.26
= control target key start
LH: loop header
LB: loop body
LE: loop exit
PB: predicated region body
PF: predicated region fallthrough
CT: control target
= control target key end

     0   :  { %vm31_vm0 = vcmask 523264   ;;  %v214_v0 = vmov 0.0   ;;  %vm215_vm1 = vmmov 0   ;;  %vm45_vm2 = vcmask 261120   ;;  %s320_s1 = inlined_call_operand.vmem [shape: f32[32,64], index: 1, kind: input, shape index: {}]   ;;  %s321_s3 = inlined_call_operand.vmem [shape: f32[16,64], index: 3, kind: output, shape index: {0}]   ;;  %s322_s0 = inlined_call_operand.vmem [shape: f32[16,32], index: 0, kind: input, shape index: {}]   ;;  %s323_s2 = inlined_call_operand.vmem [shape: f32[1,64], index: 2, kind: input, shape index: {}]   ;;  %s324_s4 = inlined_call_operand.vmem [shape: f32[16,1], index: 4, kind: output, shape index: {1}]  }
   0x1   :  { %188 = vmatprep.subr.bf16.mxu0 %v214_v0  ;;  %v39_v1 = vld [vmem:[%s320_s1] sm:$0xff]  ;;  %v40_v2 = vld [vmem:[%s320_s1 + $0x8] sm:$0xff]  ;;  %v41_v3 = vld [vmem:[%s320_s1 + $0x10] sm:$0xff]  ;;  %192 = vmatprep.mubr.msk.bf16.mxu0 %vm215_vm1, %v214_v0  ;;  %32 = vst.msk [vmem:[%s321_s3] sm:$0xff] %vm31_vm0, %v214_v0  ;;  %vm23_vm3 = vcmask 7168   ;;  %v216_v10 = vmov -inf  }
   0x2   :  { %33 = vst.msk [vmem:[%s321_s3 + $0x8] sm:$0xff] %vm31_vm0, %v214_v0  ;;  %v43_v4 = vpack.c.bf16 %v40_v2, %v39_v1  ;;  %v42_v5 = vld [vmem:[%s320_s1 + $0x18] sm:$0xff]  ;;  %v36_v7 = vld [vmem:[%s322_s0] sm:$0xff]  ;;  %v37_v8 = vld [vmem:[%s322_s0 + $0x8] sm:$0xff]  ;;  %v217_v26 = vmov 0  }
   0x3   :  { %v44_v6 = vpack.c.bf16 %v42_v5, %v41_v3  ;;  %v38_v9 = vpack.c.bf16 %v37_v8, %v36_v7  ;;  %24 = vst.msk [vmem:[#allocation2] sm:$0xff] %vm23_vm3, %v216_v10  ;;  %25 = vst.msk [vmem:[#allocation2 + $0x8] sm:$0xff] %vm23_vm3, %v216_v10  ;;  %v184_v19 = vld [vmem:[%s323_s2] ss:$0 sm:$0xff]  ;;  %200 = vset.pattern.permute.xlu1 %v217_v26  ;;  %201 = vset.pattern.permute.xlu0 %v217_v26 }
   0x4   :  { %189 = vmatpush3.bf16.msra.mxu0 %v43_v4  ;;  %26 = vst.msk [vmem:[#allocation3] sm:$0xff] %vm23_vm3, %v214_v0  ;;  %27 = vst.msk [vmem:[#allocation3 + $0x8] sm:$0xff] %vm23_vm3, %v214_v0 }
   0x5   :  { %190 = vmatprep.subr.bf16.mxu0 %v214_v0 }
   0x8   :  { %191 = vmatpush3.bf16.msra.mxu0 %v44_v6  ;;  %v34_v11 = vld [vmem:[%s321_s3] sm:$0xff] }
   0x9   :  { %v35_v13 = vld [vmem:[%s321_s3 + $0x8] sm:$0xff] }
   0xa   :  { %v111_v27 = vld [vmem:[#allocation2] sm:$0xff]  ;;  %v112_v30 = vld [vmem:[#allocation2 + $0x8] sm:$0xff] }
   0xb   :  { %193 = vmatmul.mubr.msk.bf16.vlgmr.msra.gmra.mrb[0].mxu0 %vm45_vm2, %v38_v9  ;;  %v121_v48 = vld [vmem:[#allocation3] sm:$0xff]  ;;  %v122_v52 = vld [vmem:[#allocation3 + $0x8] sm:$0xff] }
  0xde   :  { %v83_v12 = vpop.f32.mrb[0].mxu0 }
  0xdf   :  { %v90_v14 = vadd.f32 %v83_v12, %v34_v11  ;;  %v194_v15 = vpop.f32.mrb[1].mxu0 }
  0xe0   :  { %v86_v16 = vpop.f32.mrb[2].mxu0 }
  0xe1   :  { %93 = vst.msk [vmem:[%s321_s3] sm:$0xff] %vm31_vm0, %v90_v14  ;;  %v91_v17 = vadd.f32 %v86_v16, %v35_v13  ;;  %v195_v18 = vpop.f32.mrb[3].mxu0 }
  0xe3   :  { %94 = vst.msk [vmem:[%s321_s3 + $0x8] sm:$0xff] %vm31_vm0, %v91_v17 }
  0xe8   :  { %v98_v20 = vld [vmem:[%s321_s3] sm:$0xff] }
  0xe9   :  { %v107_v21 = vadd.f32 %v184_v19, %v98_v20 }
  0xea   :  { %v99_v22 = vld [vmem:[%s321_s3 + $0x8] sm:$0xff] }
  0xeb   :  { %v113_v23 = vsel %vm31_vm0, %v107_v21, -inf  ;;  %109 = vst.msk [vmem:[%s321_s3] sm:$0xff] %vm31_vm0, %v107_v21  ;;  %v108_v24 = vadd.f32 %v184_v19, %v99_v22 }
  0xec   :  { %114 = vmax.xlane.f32.xlu0 %v113_v23 }
  0xed   :  { %110 = vst.msk [vmem:[%s321_s3 + $0x8] sm:$0xff] %vm31_vm0, %v108_v24  ;;  %v116_v25 = vsel %vm31_vm0, %v108_v24, -inf }
  0xf0   :  { %117 = vmax.xlane.f32.xlu0 %v116_v25 }
 0x179   :  { %v115_v28 = vpop.xlane.xlu0 %114 }
 0x17a   :  { %v119_v29 = vmax.f32 %v111_v27, %v115_v28 }
 0x17c   :  { %v123_v31 = vsub.f32 %v111_v27, %v119_v29  ;;  %158 = vst.msk [vmem:[#allocation2] sm:$0xff] %vm23_vm3, %v119_v29  ;;  %133 = vperm.xlu1 %200, %v119_v29  }
 0x17d   :  { %v118_v32 = vpop.xlane.xlu0 %117 }
 0x17e   :  { %v120_v33 = vmax.f32 %v112_v30, %v118_v32  ;;  %v125_v45 = vmul.f32 1.442695, %v123_v31 }
 0x180   :  { %v124_v34 = vsub.f32 %v112_v30, %v120_v33  ;;  %159 = vst.msk [vmem:[#allocation2 + $0x8] sm:$0xff] %vm23_vm3, %v120_v33  ;;  %138 = vperm.xlu1 %200, %v120_v33  }
 0x182   :  { %v127_v46 = vmul.f32 1.442695, %v124_v34 }
 0x183   :  { %v162_v61 = vld [vmem:[#allocation2] sm:$0xff] }
 0x187   :  { %v163_v1 = vld [vmem:[#allocation2 + $0x8] sm:$0xff] }
 0x1fb   :  { %v134_v35 = vpop.permute.xlu1 %133 }
 0x1fc   :  { %v141_v36 = vsub.f32 %v107_v21, %v134_v35 }
 0x1fe   :  { %v143_v37 = vmul.f32 1.442695, %v141_v36 }
 0x1ff   :  { %v139_v38 = vpop.permute.xlu1 %138 }
 0x200   :  { %202 = vpow2.f32 %v143_v37  ;;  %v142_v39 = vsub.f32 %v108_v24, %v139_v38 }
 0x202   :  { %v145_v40 = vmul.f32 1.442695, %v142_v39 }
 0x204   :  { %204 = vpow2.f32 %v145_v40 }
 0x205   :  { %206 = vpow2.f32 %v125_v45 }
 0x206   :  { %208 = vpow2.f32 %v127_v46 }
 0x20a   :  { %v203_v41 = vpop.eup %202 }
 0x20b   :  { %v147_v42 = vsel %vm31_vm0, %v203_v41, 0.0 }
 0x20c   :  { %148 = vadd.xlane.f32.xlu0 %v147_v42 }
 0x20e   :  { %v205_v43 = vpop.eup %204 }
 0x20f   :  { %v150_v44 = vsel %vm31_vm0, %v205_v43, 0.0  ;;  %v207_v47 = vpop.eup %206 }
 0x210   :  { %151 = vadd.xlane.f32.xlu1 %v150_v44  ;;  %v129_v49 = vmul.f32 %v207_v47, %v121_v48  ;;  %v209_v50 = vpop.eup %208 }
 0x211   :  { %v130_v54 = vmul.f32 %v209_v50, %v122_v52 }
 0x299   :  { %v149_v51 = vpop.xlane.xlu0 %148 }
 0x29a   :  { %v153_v53 = vadd.f32 %v149_v51, %v129_v49 }
 0x29c   :  { %156 = vst.msk [vmem:[#allocation3] sm:$0xff] %vm23_vm3, %v153_v53 }
 0x29d   :  { %v152_v55 = vpop.xlane.xlu1 %151 }
 0x29e   :  { %v154_v56 = vadd.f32 %v152_v55, %v130_v54 }
 0x2a0   :  { %157 = vst.msk [vmem:[#allocation3 + $0x8] sm:$0xff] %vm23_vm3, %v154_v56 }
 0x2a3   :  { %v164_v57 = vld [vmem:[#allocation3] sm:$0xff] }
 0x2a4   :  { %210 = vlog2.f32 %v164_v57 }
 0x2a7   :  { %v165_v58 = vld [vmem:[#allocation3 + $0x8] sm:$0xff] }
 0x2a8   :  { %212 = vlog2.f32 %v165_v58 }
 0x2ae   :  { %v211_v59 = vpop.eup %210 }
 0x2af   :  { %v167_v60 = vmul.f32 0.6931472, %v211_v59 }
 0x2b1   :  { %v170_v62 = vadd.f32 %v167_v60, %v162_v61 }
 0x2b2   :  { %v213_v63 = vpop.eup %212 }
 0x2b3   :  { %173 = vst.msk [vmem:[%s324_s4] sm:$0xff] %vm23_vm3, %v170_v62  ;;  %v169_v0 = vmul.f32 0.6931472, %v213_v63 }
 0x2b5   :  { %v171_v2 = vadd.f32 %v169_v0, %v163_v1 }
 0x2b7   :  { %174 = vst.msk [vmem:[%s324_s4 + $0x8] sm:$0xff] %vm23_vm3, %v171_v2 }

</bundles_post_ra>
